<compile_context>
chip_gen: v7x
topology: tpu7x:2x2x1
jax: 0.10.0
libtpu: 0.0.40
codegen_flags: <defaults>
</compile_context>

<pallas_src>
import functools
import math

import jax
import jax.numpy as jnp
from jax import lax
from jax.experimental import pallas as pl
from jax.experimental.pallas import tpu as pltpu

_MM_DTYPE = jnp.bfloat16      # MXU operand dtype; accumulation is always f32.
_LN_EPS = 1e-5


# ------------------------------- in-kernel helpers -------------------------------

def _layer_norm_f32(x, g, b, eps):
    mean = jnp.mean(x, axis=-1, keepdims=True)
    var = jnp.mean(jnp.square(x - mean), axis=-1, keepdims=True)
    return (x - mean) * lax.rsqrt(var + eps) * g + b


def _mha_core(q, k, v, nhead):
    """Multi-head softmax(q k^T) v with the head axis as a leading batch axis.

    q: (Tq, E) f32 (already scaled by 1/sqrt(Dh)); k, v: (Tk, E) f32.
    Returns (Tq, E) f32 context (heads re-concatenated on lanes) so the caller can
    run ONE full-depth (K = E) output-projection matmul.
    """
    Tq, E = q.shape
    Dh = E // nhead

    def to_heads(t):   # (T, E) -> (H, T, Dh): static head slices stacked on a new major axis
        return jnp.stack([t[:, h * Dh:(h + 1) * Dh] for h in range(nhead)], axis=0)

    qh = to_heads(q).astype(_MM_DTYPE)     # (H, Tq, Dh)
    kh = to_heads(k).astype(_MM_DTYPE)     # (H, Tk, Dh)
    vh = to_heads(v).astype(_MM_DTYPE)     # (H, Tk, Dh)

    # Batched-over-heads score / context matmuls; bf16 operands, f32 accumulation.
    s = jnp.einsum("hqd,hkd->hqk", qh, kh, preferred_element_type=jnp.float32)
    s = s - jnp.max(s, axis=-1, keepdims=True)
    p = jnp.exp(s)
    p = p / jnp.sum(p, axis=-1, keepdims=True)        # exact divide (PyTorch parity)
    ctx = jnp.einsum("hqk,hkd->hqd", p.astype(_MM_DTYPE), vh,
                     preferred_element_type=jnp.float32)           # (H, Tq, Dh) f32
    # heads back onto the lane axis -> (Tq, E)
    return jnp.concatenate([ctx[h] for h in range(nhead)], axis=-1)


# --------------------------------- Pallas kernels ---------------------------------

def _self_attn_kernel(x_ref, g_ref, b_ref, wqkv_ref, bqkv_ref, wo_ref, bo_ref,
                      o_ref, *, nhead, scale, eps):
    # One batch element per grid step: x_ref block is (1, T, E).
    x = x_ref[0].astype(jnp.float32)                                   # (T, E)
    E = x.shape[-1]

    x2 = _layer_norm_f32(x, g_ref[...], b_ref[...], eps)

    # fused QKV projection: one bf16 matmul against the packed (E, 3E) weight
    qkv = jnp.dot(x2.astype(_MM_DTYPE), wqkv_ref[...],
                  preferred_element_type=jnp.float32) + bqkv_ref[...]   # (T, 3E) f32
    q = qkv[:, :E] * scale          # scale folded into q (T*E, not H*T*T)
    k = qkv[:, E:2 * E]
    v = qkv[:, 2 * E:]

    ctx = _mha_core(q, k, v, nhead)                                     # (T, E) f32
    out = jnp.dot(ctx.astype(_MM_DTYPE), wo_ref[...],
                  preferred_element_type=jnp.float32) + bo_ref[...]     # single K=E out-proj
    o_ref[0] = (x + out).astype(o_ref.dtype)                            # residual


def _cross_attn_kernel(x_ref, m_ref, g_ref, b_ref, wq_ref, bq_ref, wkv_ref, bkv_ref,
                       wo_ref, bo_ref, o_ref, *, nhead, scale, eps):
    x = x_ref[0].astype(jnp.float32)                                    # (Tq, E)
    m = m_ref[0]                                                        # (Tk, E)
    E = x.shape[-1]

    x2 = _layer_norm_f32(x, g_ref[...], b_ref[...], eps)

    q = (jnp.dot(x2.astype(_MM_DTYPE), wq_ref[...],
                 preferred_element_type=jnp.float32) + bq_ref[...]) * scale
    kv = jnp.dot(m.astype(_MM_DTYPE), wkv_ref[...],
                 preferred_element_type=jnp.float32) + bkv_ref[...]     # (Tk, 2E)
    k = kv[:, :E]
    v = kv[:, E:]

    ctx = _mha_core(q, k, v, nhead)
    out = jnp.dot(ctx.astype(_MM_DTYPE), wo_ref[...],
                  preferred_element_type=jnp.float32) + bo_ref[...]
    o_ref[0] = (x + out).astype(o_ref.dtype)


def _ffn_kernel(x_ref, g_ref, b_ref, w1_ref, b1_ref, w2_ref, b2_ref, o_ref, *, eps):
    x = x_ref[...].astype(jnp.float32)                                  # (tm, E)
    x2 = _layer_norm_f32(x, g_ref[...], b_ref[...], eps)
    h = jnp.dot(x2.astype(_MM_DTYPE), w1_ref[...],
                preferred_element_type=jnp.float32) + b1_ref[...]
    h = jnp.maximum(h, 0.0)                      # ReLU (dropout = identity in eval)
    y = jnp.dot(h.astype(_MM_DTYPE), w2_ref[...],
                preferred_element_type=jnp.float32) + b2_ref[...]
    o_ref[...] = (x + y).astype(o_ref.dtype)     # residual fused into epilogue


# --------------------------------- Pallas wrappers ---------------------------------

def _vmem_limit(*arrays, extra_bytes=0):
    total = extra_bytes + sum(int(a.size) * a.dtype.itemsize for a in arrays)
    # generous 2x (double-buffering) + slack, clamped to be safe on v7x's 64 MiB VMEM
    return int(min(64 * 1024 * 1024, max(32 * 1024 * 1024, 2 * total + (2 << 20))))


def self_attn_block(x, p, ln, nhead, eps=_LN_EPS):
    # x: (N, T, E) batch-major
    N, T, E = x.shape
    scale = 1.0 / math.sqrt(E // nhead)
    cost = pl.CostEstimate(
        flops=int(N * (8 * T * E * E + 4 * T * T * E)),
        transcendentals=int(N * nhead * T * T),
        bytes_accessed=int(2 * N * T * E * 4 + 4 * E * E * 2 + 4 * E * 4),
    )
    return pl.pallas_call(
        functools.partial(_self_attn_kernel, nhead=nhead, scale=scale, eps=eps),
        out_shape=jax.ShapeDtypeStruct((N, T, E), x.dtype),
        grid=(N,),
        in_specs=[pl.BlockSpec((1, T, E), lambda n: (n, 0, 0)),
                  pl.BlockSpec((1, E), lambda n: (0, 0)),
                  pl.BlockSpec((1, E), lambda n: (0, 0)),
                  pl.BlockSpec((E, 3 * E), lambda n: (0, 0)),
                  pl.BlockSpec((1, 3 * E), lambda n: (0, 0)),
                  pl.BlockSpec((E, E), lambda n: (0, 0)),
                  pl.BlockSpec((1, E), lambda n: (0, 0))],
        out_specs=pl.BlockSpec((1, T, E), lambda n: (n, 0, 0)),
        compiler_params=pltpu.CompilerParams(
            dimension_semantics=("parallel",),
            vmem_limit_bytes=_vmem_limit(p["wqkv"], p["wo"], extra_bytes=4 * T * E * 4)),
        cost_estimate=cost,
    )(x, ln["g"], ln["b"], p["wqkv"], p["bqkv"], p["wo"], p["bo"])


def cross_attn_block(x, mem, p, ln, nhead, eps=_LN_EPS):
    # x: (N, Tq, E); mem: (N, Tk, E)
    N, Tq, E = x.shape
    Tk = mem.shape[1]
    scale = 1.0 / math.sqrt(E // nhead)
    cost = pl.CostEstimate(
        flops=int(N * (4 * Tq * E * E + 4 * Tk * E * E + 4 * Tq * Tk * E)),
        transcendentals=int(N * nhead * Tq * Tk),
        bytes_accessed=int((2 * N * Tq * E + N * Tk * E) * 4 + 4 * E * E * 2),
    )
    return pl.pallas_call(
        functools.partial(_cross_attn_kernel, nhead=nhead, scale=scale, eps=eps),
        out_shape=jax.ShapeDtypeStruct((N, Tq, E), x.dtype),
        grid=(N,),
        in_specs=[pl.BlockSpec((1, Tq, E), lambda n: (n, 0, 0)),
                  pl.BlockSpec((1, Tk, E), lambda n: (n, 0, 0)),
                  pl.BlockSpec((1, E), lambda n: (0, 0)),
                  pl.BlockSpec((1, E), lambda n: (0, 0)),
                  pl.BlockSpec((E, E), lambda n: (0, 0)),
                  pl.BlockSpec((1, E), lambda n: (0, 0)),
                  pl.BlockSpec((E, 2 * E), lambda n: (0, 0)),
                  pl.BlockSpec((1, 2 * E), lambda n: (0, 0)),
                  pl.BlockSpec((E, E), lambda n: (0, 0)),
                  pl.BlockSpec((1, E), lambda n: (0, 0))],
        out_specs=pl.BlockSpec((1, Tq, E), lambda n: (n, 0, 0)),
        compiler_params=pltpu.CompilerParams(
            dimension_semantics=("parallel",),
            vmem_limit_bytes=_vmem_limit(p["wq"], p["wkv"], p["wo"],
                                         extra_bytes=(3 * Tq + 2 * Tk) * E * 4)),
        cost_estimate=cost,
    )(x, mem, ln["g"], ln["b"], p["wq"], p["bq"], p["wkv"], p["bkv"], p["wo"], p["bo"])


def ffn_block(x2d, ln, p, eps=_LN_EPS, row_tile=512):
    # x2d: (R, E); w1: (E, F) bf16; w2: (F, E) bf16. Row-tiled grid; weights VMEM-resident.
    R, E = x2d.shape
    F = p["w1"].shape[1]
    tm = R if R <= row_tile else row_tile        # tm == R or a multiple of 8 (512)
    grid = (pl.cdiv(R, tm),)
    cost = pl.CostEstimate(
        flops=int(4 * R * E * F + 10 * R * E),
        transcendentals=int(R),                   # rsqrt per row
        bytes_accessed=int(2 * R * E * 4 + 2 * E * F * 2),
    )
    return pl.pallas_call(
        functools.partial(_ffn_kernel, eps=eps),
        out_shape=jax.ShapeDtypeStruct((R, E), x2d.dtype),
        grid=grid,
        in_specs=[pl.BlockSpec((tm, E), lambda i: (i, 0)),
                  pl.BlockSpec((1, E), lambda i: (0, 0)),
                  pl.BlockSpec((1, E), lambda i: (0, 0)),
                  pl.BlockSpec((E, F), lambda i: (0, 0)),
                  pl.BlockSpec((1, F), lambda i: (0, 0)),
                  pl.BlockSpec((F, E), lambda i: (0, 0)),
                  pl.BlockSpec((1, E), lambda i: (0, 0))],
        out_specs=pl.BlockSpec((tm, E), lambda i: (i, 0)),
        compiler_params=pltpu.CompilerParams(
            dimension_semantics=("parallel",),
            vmem_limit_bytes=_vmem_limit(p["w1"], p["w2"], extra_bytes=2 * tm * (E + F) * 4)),
        cost_estimate=cost,
    )(x2d, ln["g"], ln["b"], p["w1"], p["b1"], p["w2"], p["b2"])


# ------------------------------ parameter preparation ------------------------------

def prepare_params(params):
    """One-time conversion from PyTorch-layout params to kernel layout:
    transpose/pack weights, cast matmul weights to bf16, reshape biases/LN to (1, .).
    Done once, outside the per-call forward (no per-call .T / HBM passes)."""
    E = params["norm1"]["g"].shape[0]
    F = params["ffn"]["w1"].shape[0]

    def ln(p):
        return {"g": p["g"].reshape(1, E).astype(jnp.float32),
                "b": p["b"].reshape(1, E).astype(jnp.float32)}

    sa = params["self_attn"]
    ca = params["cross_attn"]
    return {
        "self_attn": {
            "wqkv": sa["in_w"].T.astype(_MM_DTYPE),                  # (E, 3E)
            "bqkv": sa["in_b"].reshape(1, 3 * E).astype(jnp.float32),
            "wo": sa["out_w"].T.astype(_MM_DTYPE),                   # (E, E)
            "bo": sa["out_b"].reshape(1, E).astype(jnp.float32)},
        "cross_attn": {
            "wq": ca["in_w"][:E].T.astype(_MM_DTYPE),                # (E, E)
            "bq": ca["in_b"][:E].reshape(1, E).astype(jnp.float32),
            "wkv": ca["in_w"][E:].T.astype(_MM_DTYPE),               # (E, 2E)
            "bkv": ca["in_b"][E:].reshape(1, 2 * E).astype(jnp.float32),
            "wo": ca["out_w"].T.astype(_MM_DTYPE),
            "bo": ca["out_b"].reshape(1, E).astype(jnp.float32)},
        "ffn": {
            "w1": params["ffn"]["w1"].T.astype(_MM_DTYPE),           # (E, F)
            "b1": params["ffn"]["b1"].reshape(1, F).astype(jnp.float32),
            "w2": params["ffn"]["w2"].T.astype(_MM_DTYPE),           # (F, E)
            "b2": params["ffn"]["b2"].reshape(1, E).astype(jnp.float32)},
        "norm1": ln(params["norm1"]),
        "norm2": ln(params["norm2"]),
        "norm3": ln(params["norm3"]),
    }


# ------------------------------- module-level forward -------------------------------

def transformer_decoder_layer(kparams, tgt, memory, nhead, eps=_LN_EPS):
    # tgt: (T_tgt, N, E); memory: (T_src, N, E)  -- PyTorch batch_first=False layout.
    Tt, N, E = tgt.shape
    assert E % nhead == 0

    # Single layout change to batch-major; amortized across all three fused kernels.
    x = jnp.transpose(tgt, (1, 0, 2))          # (N, Tt, E)
    mem = jnp.transpose(memory, (1, 0, 2))     # (N, Ts, E)

    # self-attention sublayer (LN1 + QKV + attn + out-proj + residual)
    x = self_attn_block(x, kparams["self_attn"], kparams["norm1"], nhead, eps)

    # cross-attention sublayer (LN2 + Q/KV + attn + out-proj + residual)
    x = cross_attn_block(x, mem, kparams["cross_attn"], kparams["norm2"], nhead, eps)

    # feed-forward sublayer (LN3 + FFN + residual) -- position-wise, free reshape
    x2d = ffn_block(x.reshape(N * Tt, E), kparams["norm3"], kparams["ffn"], eps)

    return jnp.transpose(x2d.reshape(N, Tt, E), (1, 0, 2))     # back to (Tt, N, E)


# ---------------------------------- parameter init ----------------------------------

def init_params(key, d_model, dim_feedforward):
    ks = iter(jax.random.split(key, 16))

    def w(shape, scale=0.05):
        return scale * jax.random.normal(next(ks), shape, jnp.float32)

    def mha():
        return {"in_w": w((3 * d_model, d_model)),
                "in_b": w((3 * d_model,)),
                "out_w": w((d_model, d_model)),
                "out_b": w((d_model,))}

    def ln():
        return {"g": jnp.ones((d_model,), jnp.float32),
                "b": jnp.zeros((d_model,), jnp.float32)}

    return {
        "self_attn": mha(),
        "cross_attn": mha(),
        "ffn": {"w1": w((dim_feedforward, d_model)), "b1": w((dim_feedforward,)),
                "w2": w((d_model, dim_feedforward)), "b2": w((d_model,))},
        "norm1": ln(), "norm2": ln(), "norm3": ln(),
    }


# ---------------------------------------- main ----------------------------------------

if __name__ == "__main__":
    d_model, nhead, dim_feedforward = 32, 4, 64
    T_tgt, T_src, N = 8, 10, 2

    key = jax.random.PRNGKey(0)
    k_p, k_tgt, k_mem = jax.random.split(key, 3)

    params = init_params(k_p, d_model, dim_feedforward)
    kparams = prepare_params(params)          # one-time weight packing / bf16 cast

    tgt = jax.random.normal(k_tgt, (T_tgt, N, d_model), jnp.float32)
    memory = jax.random.normal(k_mem, (T_src, N, d_model), jnp.float32)

    fwd = jax.jit(functools.partial(transformer_decoder_layer, nhead=nhead))
    out = jax.block_until_ready(fwd(kparams, tgt, memory))

    assert out.shape == (T_tgt, N, d_model) and out.dtype == jnp.float32
    assert bool(jnp.all(jnp.isfinite(out)))
    print("KERNEL_OK")
</pallas_src>

<mosaic_0001>
module attributes {stable_mosaic.version = 11 : i64} {
  func.func @_self_attn_kernel(%arg0: i32, %arg1: memref<1x8x32xf32, #tpu.memory_space<vmem>>, %arg2: memref<1x32xf32, #tpu.memory_space<vmem>>, %arg3: memref<1x32xf32, #tpu.memory_space<vmem>>, %arg4: memref<32x96xbf16, #tpu.memory_space<vmem>>, %arg5: memref<1x96xf32, #tpu.memory_space<vmem>>, %arg6: memref<32x32xbf16, #tpu.memory_space<vmem>>, %arg7: memref<1x32xf32, #tpu.memory_space<vmem>>, %arg8: memref<1x8x32xf32, #tpu.memory_space<vmem>>) attributes {dimension_semantics = [#tpu.dimension_semantics<parallel>], iteration_bounds = array<i64: 2>, scalar_prefetch = 0 : i64, scratch_operands = 0 : i64, tpu.core_type = #tpu.core_type<tc>, window_params = [{transform_indices = @transform_0, window_bounds = array<i64: 1, 8, 32>}, {pipeline_mode = #tpu.pipeline_mode<synchronous>, transform_indices = @transform_1, window_bounds = array<i64: 1, 32>}, {pipeline_mode = #tpu.pipeline_mode<synchronous>, transform_indices = @transform_2, window_bounds = array<i64: 1, 32>}, {pipeline_mode = #tpu.pipeline_mode<synchronous>, transform_indices = @transform_3, window_bounds = array<i64: 32, 96>}, {pipeline_mode = #tpu.pipeline_mode<synchronous>, transform_indices = @transform_4, window_bounds = array<i64: 1, 96>}, {pipeline_mode = #tpu.pipeline_mode<synchronous>, transform_indices = @transform_5, window_bounds = array<i64: 32, 32>}, {pipeline_mode = #tpu.pipeline_mode<synchronous>, transform_indices = @transform_6, window_bounds = array<i64: 1, 32>}, {transform_indices = @transform_7, window_bounds = array<i64: 1, 8, 32>}]} {
    %c0 = arith.constant 0 : index
    %c0_0 = arith.constant 0 : index
    %c0_1 = arith.constant 0 : index
    %0 = vector.load %arg1[%c0, %c0_0, %c0_1] : memref<1x8x32xf32, #tpu.memory_space<vmem>>, vector<1x8x32xf32>
    %1 = vector.shape_cast %0 : vector<1x8x32xf32> to vector<8x32xf32>
    %c0_2 = arith.constant 0 : index
    %c0_3 = arith.constant 0 : index
    %2 = vector.load %arg2[%c0_2, %c0_3] : memref<1x32xf32, #tpu.memory_space<vmem>>, vector<1x32xf32>
    %c0_4 = arith.constant 0 : index
    %c0_5 = arith.constant 0 : index
    %3 = vector.load %arg3[%c0_4, %c0_5] : memref<1x32xf32, #tpu.memory_space<vmem>>, vector<1x32xf32>
    %cst = arith.constant dense<0.000000e+00> : vector<8xf32>
    %4 = vector.multi_reduction <add>, %1, %cst [1] : vector<8x32xf32> to vector<8xf32>
    %5 = vector.shape_cast %4 : vector<8xf32> to vector<8x1xf32>
    %cst_6 = arith.constant 3.200000e+01 : f32
    %6 = vector.broadcast %cst_6 : f32 to vector<8x1xf32>
    %7 = arith.divf %5, %6 : vector<8x1xf32>
    %8 = vector.broadcast %7 : vector<8x1xf32> to vector<8x32xf32>
    %9 = arith.subf %1, %8 : vector<8x32xf32>
    %10 = arith.mulf %9, %9 : vector<8x32xf32>
    %cst_7 = arith.constant dense<0.000000e+00> : vector<8xf32>
    %11 = vector.multi_reduction <add>, %10, %cst_7 [1] : vector<8x32xf32> to vector<8xf32>
    %12 = vector.shape_cast %11 : vector<8xf32> to vector<8x1xf32>
    %cst_8 = arith.constant 3.200000e+01 : f32
    %13 = vector.broadcast %cst_8 : f32 to vector<8x1xf32>
    %14 = arith.divf %12, %13 : vector<8x1xf32>
    %15 = vector.broadcast %7 : vector<8x1xf32> to vector<8x32xf32>
    %16 = arith.subf %1, %15 : vector<8x32xf32>
    %cst_9 = arith.constant 9.99999974E-6 : f32
    %17 = vector.broadcast %cst_9 : f32 to vector<8x1xf32>
    %18 = arith.addf %14, %17 : vector<8x1xf32>
    %19 = math.rsqrt %18 : vector<8x1xf32>
    %20 = vector.broadcast %19 : vector<8x1xf32> to vector<8x32xf32>
    %21 = arith.mulf %16, %20 : vector<8x32xf32>
    %22 = vector.broadcast %2 : vector<1x32xf32> to vector<8x32xf32>
    %23 = arith.mulf %21, %22 : vector<8x32xf32>
    %24 = vector.broadcast %3 : vector<1x32xf32> to vector<8x32xf32>
    %25 = arith.addf %23, %24 : vector<8x32xf32>
    %26 = arith.truncf %25 : vector<8x32xf32> to vector<8x32xbf16>
    %c0_10 = arith.constant 0 : index
    %c0_11 = arith.constant 0 : index
    %27 = vector.load %arg4[%c0_10, %c0_11] : memref<32x96xbf16, #tpu.memory_space<vmem>>, vector<32x96xbf16>
    %cst_12 = arith.constant dense<0.000000e+00> : vector<8x96xf32>
    %28 = tpu.matmul %26, %27, %cst_12 {dimension_numbers = #tpu.dot_dimension_numbers<[1], [0], [0], [1], [0, 0, 1, 1], [], []>} : vector<8x32xbf16>, vector<32x96xbf16>, vector<8x96xf32> -> vector<8x96xf32>
    %c0_13 = arith.constant 0 : index
    %c0_14 = arith.constant 0 : index
    %29 = vector.load %arg5[%c0_13, %c0_14] : memref<1x96xf32, #tpu.memory_space<vmem>>, vector<1x96xf32>
    %30 = vector.broadcast %29 : vector<1x96xf32> to vector<8x96xf32>
    %31 = arith.addf %28, %30 : vector<8x96xf32>
    %32 = vector.extract_strided_slice %31 {offsets = [0, 0], sizes = [8, 32], strides = [1, 1]} : vector<8x96xf32> to vector<8x32xf32>
    %cst_15 = arith.constant 0.353553385 : f32
    %33 = vector.broadcast %cst_15 : f32 to vector<8x32xf32>
    %34 = arith.mulf %32, %33 : vector<8x32xf32>
    %35 = vector.extract_strided_slice %31 {offsets = [0, 32], sizes = [8, 32], strides = [1, 1]} : vector<8x96xf32> to vector<8x32xf32>
    %36 = vector.extract_strided_slice %31 {offsets = [0, 64], sizes = [8, 32], strides = [1, 1]} : vector<8x96xf32> to vector<8x32xf32>
    %37 = vector.extract_strided_slice %34 {offsets = [0, 0], sizes = [8, 8], strides = [1, 1]} : vector<8x32xf32> to vector<8x8xf32>
    %38 = vector.extract_strided_slice %34 {offsets = [0, 8], sizes = [8, 8], strides = [1, 1]} : vector<8x32xf32> to vector<8x8xf32>
    %39 = vector.extract_strided_slice %34 {offsets = [0, 16], sizes = [8, 8], strides = [1, 1]} : vector<8x32xf32> to vector<8x8xf32>
    %40 = vector.extract_strided_slice %34 {offsets = [0, 24], sizes = [8, 8], strides = [1, 1]} : vector<8x32xf32> to vector<8x8xf32>
    %41 = vector.shape_cast %37 : vector<8x8xf32> to vector<1x8x8xf32>
    %42 = vector.shape_cast %38 : vector<8x8xf32> to vector<1x8x8xf32>
    %43 = vector.shape_cast %39 : vector<8x8xf32> to vector<1x8x8xf32>
    %44 = vector.shape_cast %40 : vector<8x8xf32> to vector<1x8x8xf32>
    %45 = tpu.concatenate %41, %42, %43, %44 in 0 : vector<1x8x8xf32>, vector<1x8x8xf32>, vector<1x8x8xf32>, vector<1x8x8xf32> -> vector<4x8x8xf32>
    %46 = arith.truncf %45 : vector<4x8x8xf32> to vector<4x8x8xbf16>
    %47 = vector.extract_strided_slice %35 {offsets = [0, 0], sizes = [8, 8], strides = [1, 1]} : vector<8x32xf32> to vector<8x8xf32>
    %48 = vector.extract_strided_slice %35 {offsets = [0, 8], sizes = [8, 8], strides = [1, 1]} : vector<8x32xf32> to vector<8x8xf32>
    %49 = vector.extract_strided_slice %35 {offsets = [0, 16], sizes = [8, 8], strides = [1, 1]} : vector<8x32xf32> to vector<8x8xf32>
    %50 = vector.extract_strided_slice %35 {offsets = [0, 24], sizes = [8, 8], strides = [1, 1]} : vector<8x32xf32> to vector<8x8xf32>
    %51 = vector.shape_cast %47 : vector<8x8xf32> to vector<1x8x8xf32>
    %52 = vector.shape_cast %48 : vector<8x8xf32> to vector<1x8x8xf32>
    %53 = vector.shape_cast %49 : vector<8x8xf32> to vector<1x8x8xf32>
    %54 = vector.shape_cast %50 : vector<8x8xf32> to vector<1x8x8xf32>
    %55 = tpu.concatenate %51, %52, %53, %54 in 0 : vector<1x8x8xf32>, vector<1x8x8xf32>, vector<1x8x8xf32>, vector<1x8x8xf32> -> vector<4x8x8xf32>
    %56 = arith.truncf %55 : vector<4x8x8xf32> to vector<4x8x8xbf16>
    %57 = vector.extract_strided_slice %36 {offsets = [0, 0], sizes = [8, 8], strides = [1, 1]} : vector<8x32xf32> to vector<8x8xf32>
    %58 = vector.extract_strided_slice %36 {offsets = [0, 8], sizes = [8, 8], strides = [1, 1]} : vector<8x32xf32> to vector<8x8xf32>
    %59 = vector.extract_strided_slice %36 {offsets = [0, 16], sizes = [8, 8], strides = [1, 1]} : vector<8x32xf32> to vector<8x8xf32>
    %60 = vector.extract_strided_slice %36 {offsets = [0, 24], sizes = [8, 8], strides = [1, 1]} : vector<8x32xf32> to vector<8x8xf32>
    %61 = vector.shape_cast %57 : vector<8x8xf32> to vector<1x8x8xf32>
    %62 = vector.shape_cast %58 : vector<8x8xf32> to vector<1x8x8xf32>
    %63 = vector.shape_cast %59 : vector<8x8xf32> to vector<1x8x8xf32>
    %64 = vector.shape_cast %60 : vector<8x8xf32> to vector<1x8x8xf32>
    %65 = tpu.concatenate %61, %62, %63, %64 in 0 : vector<1x8x8xf32>, vector<1x8x8xf32>, vector<1x8x8xf32>, vector<1x8x8xf32> -> vector<4x8x8xf32>
    %66 = arith.truncf %65 : vector<4x8x8xf32> to vector<4x8x8xbf16>
    "tpu.trace_start"() <{level = 10 : i32, message = "hqd,hkd->hqk"}> : () -> ()
    %cst_16 = arith.constant dense<0.000000e+00> : vector<4x8x8xf32>
    %67 = tpu.matmul %46, %56, %cst_16 {dimension_numbers = #tpu.dot_dimension_numbers<[2], [2], [1], [1], [0, 0, 0, 1, 1, 1], [0], [0]>} : vector<4x8x8xbf16>, vector<4x8x8xbf16>, vector<4x8x8xf32> -> vector<4x8x8xf32>
    "tpu.trace_stop"() : () -> ()
    %cst_17 = arith.constant dense<0xFF800000> : vector<4x8xf32>
    %68 = vector.multi_reduction <maximumf>, %67, %cst_17 [2] : vector<4x8x8xf32> to vector<4x8xf32>
    %69 = vector.shape_cast %68 : vector<4x8xf32> to vector<4x8x1xf32>
    %70 = vector.broadcast %69 : vector<4x8x1xf32> to vector<4x8x8xf32>
    %71 = arith.subf %67, %70 : vector<4x8x8xf32>
    %72 = math.exp %71 : vector<4x8x8xf32>
    %cst_18 = arith.constant dense<0.000000e+00> : vector<4x8xf32>
    %73 = vector.multi_reduction <add>, %72, %cst_18 [2] : vector<4x8x8xf32> to vector<4x8xf32>
    %74 = vector.shape_cast %73 : vector<4x8xf32> to vector<4x8x1xf32>
    %75 = vector.broadcast %74 : vector<4x8x1xf32> to vector<4x8x8xf32>
    %76 = arith.divf %72, %75 : vector<4x8x8xf32>
    %77 = arith.truncf %76 : vector<4x8x8xf32> to vector<4x8x8xbf16>
    "tpu.trace_start"() <{level = 10 : i32, message = "hqk,hkd->hqd"}> : () -> ()
    %cst_19 = arith.constant dense<0.000000e+00> : vector<4x8x8xf32>
    %78 = tpu.matmul %77, %66, %cst_19 {dimension_numbers = #tpu.dot_dimension_numbers<[2], [1], [1], [2], [0, 0, 0, 1, 1, 2], [0], [0]>} : vector<4x8x8xbf16>, vector<4x8x8xbf16>, vector<4x8x8xf32> -> vector<4x8x8xf32>
    "tpu.trace_stop"() : () -> ()
    %79 = vector.extract_strided_slice %78 {offsets = [0, 0, 0], sizes = [1, 8, 8], strides = [1, 1, 1]} : vector<4x8x8xf32> to vector<1x8x8xf32>
    %80 = vector.shape_cast %79 : vector<1x8x8xf32> to vector<8x8xf32>
    %81 = vector.extract_strided_slice %78 {offsets = [1, 0, 0], sizes = [1, 8, 8], strides = [1, 1, 1]} : vector<4x8x8xf32> to vector<1x8x8xf32>
    %82 = vector.shape_cast %81 : vector<1x8x8xf32> to vector<8x8xf32>
    %83 = vector.extract_strided_slice %78 {offsets = [2, 0, 0], sizes = [1, 8, 8], strides = [1, 1, 1]} : vector<4x8x8xf32> to vector<1x8x8xf32>
    %84 = vector.shape_cast %83 : vector<1x8x8xf32> to vector<8x8xf32>
    %85 = vector.extract_strided_slice %78 {offsets = [3, 0, 0], sizes = [1, 8, 8], strides = [1, 1, 1]} : vector<4x8x8xf32> to vector<1x8x8xf32>
    %86 = vector.shape_cast %85 : vector<1x8x8xf32> to vector<8x8xf32>
    %87 = tpu.concatenate %80, %82, %84, %86 in 1 : vector<8x8xf32>, vector<8x8xf32>, vector<8x8xf32>, vector<8x8xf32> -> vector<8x32xf32>
    %88 = arith.truncf %87 : vector<8x32xf32> to vector<8x32xbf16>
    %c0_20 = arith.constant 0 : index
    %c0_21 = arith.constant 0 : index
    %89 = vector.load %arg6[%c0_20, %c0_21] : memref<32x32xbf16, #tpu.memory_space<vmem>>, vector<32x32xbf16>
    %cst_22 = arith.constant dense<0.000000e+00> : vector<8x32xf32>
    %90 = tpu.matmul %88, %89, %cst_22 {dimension_numbers = #tpu.dot_dimension_numbers<[1], [0], [0], [1], [0, 0, 1, 1], [], []>} : vector<8x32xbf16>, vector<32x32xbf16>, vector<8x32xf32> -> vector<8x32xf32>
    %c0_23 = arith.constant 0 : index
    %c0_24 = arith.constant 0 : index
    %91 = vector.load %arg7[%c0_23, %c0_24] : memref<1x32xf32, #tpu.memory_space<vmem>>, vector<1x32xf32>
    %92 = vector.broadcast %91 : vector<1x32xf32> to vector<8x32xf32>
    %93 = arith.addf %90, %92 : vector<8x32xf32>
    %94 = arith.addf %1, %93 : vector<8x32xf32>
    %c0_25 = arith.constant 0 : index
    %c0_26 = arith.constant 0 : index
    %c0_27 = arith.constant 0 : index
    %95 = vector.load %arg8[%c0_25, %c0_26, %c0_27] : memref<1x8x32xf32, #tpu.memory_space<vmem>>, vector<1x8x32xf32>
    %96 = vector.shape_cast %95 : vector<1x8x32xf32> to vector<8x32xf32>
    %97 = vector.shape_cast %94 : vector<8x32xf32> to vector<1x8x32xf32>
    tpu.vector_store %arg8[%c0_25, %c0_26, %c0_27], %97 {strides = array<i32>} : memref<1x8x32xf32, #tpu.memory_space<vmem>>, vector<1x8x32xf32>,
    return
  }
  func.func @transform_0(%arg0: i32) -> (i32, i32, i32) {
    %c0_i32 = arith.constant 0 : i32
    %c0_i32_0 = arith.constant 0 : i32
    %c0_i32_1 = arith.constant 0 : i32
    return %arg0, %c0_i32, %c0_i32_0 : i32, i32, i32
  }
  func.func @transform_1(%arg0: i32) -> (i32, i32) {
    %c0_i32 = arith.constant 0 : i32
    %c0_i32_0 = arith.constant 0 : i32
    %c0_i32_1 = arith.constant 0 : i32
    return %c0_i32, %c0_i32_0 : i32, i32
  }
  func.func @transform_2(%arg0: i32) -> (i32, i32) {
    %c0_i32 = arith.constant 0 : i32
    %c0_i32_0 = arith.constant 0 : i32
    %c0_i32_1 = arith.constant 0 : i32
    return %c0_i32, %c0_i32_0 : i32, i32
  }
  func.func @transform_3(%arg0: i32) -> (i32, i32) {
    %c0_i32 = arith.constant 0 : i32
    %c0_i32_0 = arith.constant 0 : i32
    %c0_i32_1 = arith.constant 0 : i32
    return %c0_i32, %c0_i32_0 : i32, i32
  }
  func.func @transform_4(%arg0: i32) -> (i32, i32) {
    %c0_i32 = arith.constant 0 : i32
    %c0_i32_0 = arith.constant 0 : i32
    %c0_i32_1 = arith.constant 0 : i32
    return %c0_i32, %c0_i32_0 : i32, i32
  }
  func.func @transform_5(%arg0: i32) -> (i32, i32) {
    %c0_i32 = arith.constant 0 : i32
    %c0_i32_0 = arith.constant 0 : i32
    %c0_i32_1 = arith.constant 0 : i32
    return %c0_i32, %c0_i32_0 : i32, i32
  }
  func.func @transform_6(%arg0: i32) -> (i32, i32) {
    %c0_i32 = arith.constant 0 : i32
    %c0_i32_0 = arith.constant 0 : i32
    %c0_i32_1 = arith.constant 0 : i32
    return %c0_i32, %c0_i32_0 : i32, i32
  }
  func.func @transform_7(%arg0: i32) -> (i32, i32, i32) {
    %c0_i32 = arith.constant 0 : i32
    %c0_i32_0 = arith.constant 0 : i32
    %c0_i32_1 = arith.constant 0 : i32
    return %arg0, %c0_i32, %c0_i32_0 : i32, i32, i32
  }
}

module attributes {stable_mosaic.version = 11 : i64} {
  func.func @_cross_attn_kernel(%arg0: i32, %arg1: memref<1x8x32xf32, #tpu.memory_space<vmem>>, %arg2: memref<1x10x32xf32, #tpu.memory_space<vmem>>, %arg3: memref<1x32xf32, #tpu.memory_space<vmem>>, %arg4: memref<1x32xf32, #tpu.memory_space<vmem>>, %arg5: memref<32x32xbf16, #tpu.memory_space<vmem>>, %arg6: memref<1x32xf32, #tpu.memory_space<vmem>>, %arg7: memref<32x64xbf16, #tpu.memory_space<vmem>>, %arg8: memref<1x64xf32, #tpu.memory_space<vmem>>, %arg9: memref<32x32xbf16, #tpu.memory_space<vmem>>, %arg10: memref<1x32xf32, #tpu.memory_space<vmem>>, %arg11: memref<1x8x32xf32, #tpu.memory_space<vmem>>) attributes {dimension_semantics = [#tpu.dimension_semantics<parallel>], iteration_bounds = array<i64: 2>, scalar_prefetch = 0 : i64, scratch_operands = 0 : i64, tpu.core_type = #tpu.core_type<tc>, window_params = [{transform_indices = @transform_0, window_bounds = array<i64: 1, 8, 32>}, {transform_indices = @transform_1, window_bounds = array<i64: 1, 10, 32>}, {pipeline_mode = #tpu.pipeline_mode<synchronous>, transform_indices = @transform_2, window_bounds = array<i64: 1, 32>}, {pipeline_mode = #tpu.pipeline_mode<synchronous>, transform_indices = @transform_3, window_bounds = array<i64: 1, 32>}, {pipeline_mode = #tpu.pipeline_mode<synchronous>, transform_indices = @transform_4, window_bounds = array<i64: 32, 32>}, {pipeline_mode = #tpu.pipeline_mode<synchronous>, transform_indices = @transform_5, window_bounds = array<i64: 1, 32>}, {pipeline_mode = #tpu.pipeline_mode<synchronous>, transform_indices = @transform_6, window_bounds = array<i64: 32, 64>}, {pipeline_mode = #tpu.pipeline_mode<synchronous>, transform_indices = @transform_7, window_bounds = array<i64: 1, 64>}, {pipeline_mode = #tpu.pipeline_mode<synchronous>, transform_indices = @transform_8, window_bounds = array<i64: 32, 32>}, {pipeline_mode = #tpu.pipeline_mode<synchronous>, transform_indices = @transform_9, window_bounds = array<i64: 1, 32>}, {transform_indices = @transform_10, window_bounds = array<i64: 1, 8, 32>}]} {
    %c0 = arith.constant 0 : index
    %c0_0 = arith.constant 0 : index
    %c0_1 = arith.constant 0 : index
    %0 = vector.load %arg1[%c0, %c0_0, %c0_1] : memref<1x8x32xf32, #tpu.memory_space<vmem>>, vector<1x8x32xf32>
    %1 = vector.shape_cast %0 : vector<1x8x32xf32> to vector<8x32xf32>
    %c0_2 = arith.constant 0 : index
    %c0_3 = arith.constant 0 : index
    %c0_4 = arith.constant 0 : index
    %2 = vector.load %arg2[%c0_2, %c0_3, %c0_4] : memref<1x10x32xf32, #tpu.memory_space<vmem>>, vector<1x10x32xf32>
    %3 = vector.shape_cast %2 : vector<1x10x32xf32> to vector<10x32xf32>
    %c0_5 = arith.constant 0 : index
    %c0_6 = arith.constant 0 : index
    %4 = vector.load %arg3[%c0_5, %c0_6] : memref<1x32xf32, #tpu.memory_space<vmem>>, vector<1x32xf32>
    %c0_7 = arith.constant 0 : index
    %c0_8 = arith.constant 0 : index
    %5 = vector.load %arg4[%c0_7, %c0_8] : memref<1x32xf32, #tpu.memory_space<vmem>>, vector<1x32xf32>
    %cst = arith.constant dense<0.000000e+00> : vector<8xf32>
    %6 = vector.multi_reduction <add>, %1, %cst [1] : vector<8x32xf32> to vector<8xf32>
    %7 = vector.shape_cast %6 : vector<8xf32> to vector<8x1xf32>
    %cst_9 = arith.constant 3.200000e+01 : f32
    %8 = vector.broadcast %cst_9 : f32 to vector<8x1xf32>
    %9 = arith.divf %7, %8 : vector<8x1xf32>
    %10 = vector.broadcast %9 : vector<8x1xf32> to vector<8x32xf32>
    %11 = arith.subf %1, %10 : vector<8x32xf32>
    %12 = arith.mulf %11, %11 : vector<8x32xf32>
    %cst_10 = arith.constant dense<0.000000e+00> : vector<8xf32>
    %13 = vector.multi_reduction <add>, %12, %cst_10 [1] : vector<8x32xf32> to vector<8xf32>
    %14 = vector.shape_cast %13 : vector<8xf32> to vector<8x1xf32>
    %cst_11 = arith.constant 3.200000e+01 : f32
    %15 = vector.broadcast %cst_11 : f32 to vector<8x1xf32>
    %16 = arith.divf %14, %15 : vector<8x1xf32>
    %17 = vector.broadcast %9 : vector<8x1xf32> to vector<8x32xf32>
    %18 = arith.subf %1, %17 : vector<8x32xf32>
    %cst_12 = arith.constant 9.99999974E-6 : f32
    %19 = vector.broadcast %cst_12 : f32 to vector<8x1xf32>
    %20 = arith.addf %16, %19 : vector<8x1xf32>
    %21 = math.rsqrt %20 : vector<8x1xf32>
    %22 = vector.broadcast %21 : vector<8x1xf32> to vector<8x32xf32>
    %23 = arith.mulf %18, %22 : vector<8x32xf32>
    %24 = vector.broadcast %4 : vector<1x32xf32> to vector<8x32xf32>
    %25 = arith.mulf %23, %24 : vector<8x32xf32>
    %26 = vector.broadcast %5 : vector<1x32xf32> to vector<8x32xf32>
    %27 = arith.addf %25, %26 : vector<8x32xf32>
    %28 = arith.truncf %27 : vector<8x32xf32> to vector<8x32xbf16>
    %c0_13 = arith.constant 0 : index
    %c0_14 = arith.constant 0 : index
    %29 = vector.load %arg5[%c0_13, %c0_14] : memref<32x32xbf16, #tpu.memory_space<vmem>>, vector<32x32xbf16>
    %cst_15 = arith.constant dense<0.000000e+00> : vector<8x32xf32>
    %30 = tpu.matmul %28, %29, %cst_15 {dimension_numbers = #tpu.dot_dimension_numbers<[1], [0], [0], [1], [0, 0, 1, 1], [], []>} : vector<8x32xbf16>, vector<32x32xbf16>, vector<8x32xf32> -> vector<8x32xf32>
    %c0_16 = arith.constant 0 : index
    %c0_17 = arith.constant 0 : index
    %31 = vector.load %arg6[%c0_16, %c0_17] : memref<1x32xf32, #tpu.memory_space<vmem>>, vector<1x32xf32>
    %32 = vector.broadcast %31 : vector<1x32xf32> to vector<8x32xf32>
    %33 = arith.addf %30, %32 : vector<8x32xf32>
    %cst_18 = arith.constant 0.353553385 : f32
    %34 = vector.broadcast %cst_18 : f32 to vector<8x32xf32>
    %35 = arith.mulf %33, %34 : vector<8x32xf32>
    %36 = arith.truncf %3 : vector<10x32xf32> to vector<10x32xbf16>
    %c0_19 = arith.constant 0 : index
    %c0_20 = arith.constant 0 : index
    %37 = vector.load %arg7[%c0_19, %c0_20] : memref<32x64xbf16, #tpu.memory_space<vmem>>, vector<32x64xbf16>
    %cst_21 = arith.constant dense<0.000000e+00> : vector<10x64xf32>
    %38 = tpu.matmul %36, %37, %cst_21 {dimension_numbers = #tpu.dot_dimension_numbers<[1], [0], [0], [1], [0, 0, 1, 1], [], []>} : vector<10x32xbf16>, vector<32x64xbf16>, vector<10x64xf32> -> vector<10x64xf32>
    %c0_22 = arith.constant 0 : index
    %c0_23 = arith.constant 0 : index
    %39 = vector.load %arg8[%c0_22, %c0_23] : memref<1x64xf32, #tpu.memory_space<vmem>>, vector<1x64xf32>
    %40 = vector.broadcast %39 : vector<1x64xf32> to vector<10x64xf32>
    %41 = arith.addf %38, %40 : vector<10x64xf32>
    %42 = vector.extract_strided_slice %41 {offsets = [0, 0], sizes = [10, 32], strides = [1, 1]} : vector<10x64xf32> to vector<10x32xf32>
    %43 = vector.extract_strided_slice %41 {offsets = [0, 32], sizes = [10, 32], strides = [1, 1]} : vector<10x64xf32> to vector<10x32xf32>
    %44 = vector.extract_strided_slice %35 {offsets = [0, 0], sizes = [8, 8], strides = [1, 1]} : vector<8x32xf32> to vector<8x8xf32>
    %45 = vector.extract_strided_slice %35 {offsets = [0, 8], sizes = [8, 8], strides = [1, 1]} : vector<8x32xf32> to vector<8x8xf32>
    %46 = vector.extract_strided_slice %35 {offsets = [0, 16], sizes = [8, 8], strides = [1, 1]} : vector<8x32xf32> to vector<8x8xf32>
    %47 = vector.extract_strided_slice %35 {offsets = [0, 24], sizes = [8, 8], strides = [1, 1]} : vector<8x32xf32> to vector<8x8xf32>
    %48 = vector.shape_cast %44 : vector<8x8xf32> to vector<1x8x8xf32>
    %49 = vector.shape_cast %45 : vector<8x8xf32> to vector<1x8x8xf32>
    %50 = vector.shape_cast %46 : vector<8x8xf32> to vector<1x8x8xf32>
    %51 = vector.shape_cast %47 : vector<8x8xf32> to vector<1x8x8xf32>
    %52 = tpu.concatenate %48, %49, %50, %51 in 0 : vector<1x8x8xf32>, vector<1x8x8xf32>, vector<1x8x8xf32>, vector<1x8x8xf32> -> vector<4x8x8xf32>
    %53 = arith.truncf %52 : vector<4x8x8xf32> to vector<4x8x8xbf16>
    %54 = vector.extract_strided_slice %42 {offsets = [0, 0], sizes = [10, 8], strides = [1, 1]} : vector<10x32xf32> to vector<10x8xf32>
    %55 = vector.extract_strided_slice %42 {offsets = [0, 8], sizes = [10, 8], strides = [1, 1]} : vector<10x32xf32> to vector<10x8xf32>
    %56 = vector.extract_strided_slice %42 {offsets = [0, 16], sizes = [10, 8], strides = [1, 1]} : vector<10x32xf32> to vector<10x8xf32>
    %57 = vector.extract_strided_slice %42 {offsets = [0, 24], sizes = [10, 8], strides = [1, 1]} : vector<10x32xf32> to vector<10x8xf32>
    %58 = vector.shape_cast %54 : vector<10x8xf32> to vector<1x10x8xf32>
    %59 = vector.shape_cast %55 : vector<10x8xf32> to vector<1x10x8xf32>
    %60 = vector.shape_cast %56 : vector<10x8xf32> to vector<1x10x8xf32>
    %61 = vector.shape_cast %57 : vector<10x8xf32> to vector<1x10x8xf32>
    %62 = tpu.concatenate %58, %59, %60, %61 in 0 : vector<1x10x8xf32>, vector<1x10x8xf32>, vector<1x10x8xf32>, vector<1x10x8xf32> -> vector<4x10x8xf32>
    %63 = arith.truncf %62 : vector<4x10x8xf32> to vector<4x10x8xbf16>
    %64 = vector.extract_strided_slice %43 {offsets = [0, 0], sizes = [10, 8], strides = [1, 1]} : vector<10x32xf32> to vector<10x8xf32>
    %65 = vector.extract_strided_slice %43 {offsets = [0, 8], sizes = [10, 8], strides = [1, 1]} : vector<10x32xf32> to vector<10x8xf32>
    %66 = vector.extract_strided_slice %43 {offsets = [0, 16], sizes = [10, 8], strides = [1, 1]} : vector<10x32xf32> to vector<10x8xf32>
    %67 = vector.extract_strided_slice %43 {offsets = [0, 24], sizes = [10, 8], strides = [1, 1]} : vector<10x32xf32> to vector<10x8xf32>
    %68 = vector.shape_cast %64 : vector<10x8xf32> to vector<1x10x8xf32>
    %69 = vector.shape_cast %65 : vector<10x8xf32> to vector<1x10x8xf32>
    %70 = vector.shape_cast %66 : vector<10x8xf32> to vector<1x10x8xf32>
    %71 = vector.shape_cast %67 : vector<10x8xf32> to vector<1x10x8xf32>
    %72 = tpu.concatenate %68, %69, %70, %71 in 0 : vector<1x10x8xf32>, vector<1x10x8xf32>, vector<1x10x8xf32>, vector<1x10x8xf32> -> vector<4x10x8xf32>
    %73 = arith.truncf %72 : vector<4x10x8xf32> to vector<4x10x8xbf16>
    "tpu.trace_start"() <{level = 10 : i32, message = "hqd,hkd->hqk"}> : () -> ()
    %cst_24 = arith.constant dense<0.000000e+00> : vector<4x8x10xf32>
    %74 = tpu.matmul %53, %63, %cst_24 {dimension_numbers = #tpu.dot_dimension_numbers<[2], [2], [1], [1], [0, 0, 0, 1, 1, 1], [0], [0]>} : vector<4x8x8xbf16>, vector<4x10x8xbf16>, vector<4x8x10xf32> -> vector<4x8x10xf32>
    "tpu.trace_stop"() : () -> ()
    %cst_25 = arith.constant dense<0xFF800000> : vector<4x8xf32>
    %75 = vector.multi_reduction <maximumf>, %74, %cst_25 [2] : vector<4x8x10xf32> to vector<4x8xf32>
    %76 = vector.shape_cast %75 : vector<4x8xf32> to vector<4x8x1xf32>
    %77 = vector.broadcast %76 : vector<4x8x1xf32> to vector<4x8x10xf32>
    %78 = arith.subf %74, %77 : vector<4x8x10xf32>
    %79 = math.exp %78 : vector<4x8x10xf32>
    %cst_26 = arith.constant dense<0.000000e+00> : vector<4x8xf32>
    %80 = vector.multi_reduction <add>, %79, %cst_26 [2] : vector<4x8x10xf32> to vector<4x8xf32>
    %81 = vector.shape_cast %80 : vector<4x8xf32> to vector<4x8x1xf32>
    %82 = vector.broadcast %81 : vector<4x8x1xf32> to vector<4x8x10xf32>
    %83 = arith.divf %79, %82 : vector<4x8x10xf32>
    %84 = arith.truncf %83 : vector<4x8x10xf32> to vector<4x8x10xbf16>
    "tpu.trace_start"() <{level = 10 : i32, message = "hqk,hkd->hqd"}> : () -> ()
    %cst_27 = arith.constant dense<0.000000e+00> : vector<4x8x8xf32>
    %85 = tpu.matmul %84, %73, %cst_27 {dimension_numbers = #tpu.dot_dimension_numbers<[2], [1], [1], [2], [0, 0, 0, 1, 1, 2], [0], [0]>} : vector<4x8x10xbf16>, vector<4x10x8xbf16>, vector<4x8x8xf32> -> vector<4x8x8xf32>
    "tpu.trace_stop"() : () -> ()
    %86 = vector.extract_strided_slice %85 {offsets = [0, 0, 0], sizes = [1, 8, 8], strides = [1, 1, 1]} : vector<4x8x8xf32> to vector<1x8x8xf32>
    %87 = vector.shape_cast %86 : vector<1x8x8xf32> to vector<8x8xf32>
    %88 = vector.extract_strided_slice %85 {offsets = [1, 0, 0], sizes = [1, 8, 8], strides = [1, 1, 1]} : vector<4x8x8xf32> to vector<1x8x8xf32>
    %89 = vector.shape_cast %88 : vector<1x8x8xf32> to vector<8x8xf32>
    %90 = vector.extract_strided_slice %85 {offsets = [2, 0, 0], sizes = [1, 8, 8], strides = [1, 1, 1]} : vector<4x8x8xf32> to vector<1x8x8xf32>
    %91 = vector.shape_cast %90 : vector<1x8x8xf32> to vector<8x8xf32>
    %92 = vector.extract_strided_slice %85 {offsets = [3, 0, 0], sizes = [1, 8, 8], strides = [1, 1, 1]} : vector<4x8x8xf32> to vector<1x8x8xf32>
    %93 = vector.shape_cast %92 : vector<1x8x8xf32> to vector<8x8xf32>
    %94 = tpu.concatenate %87, %89, %91, %93 in 1 : vector<8x8xf32>, vector<8x8xf32>, vector<8x8xf32>, vector<8x8xf32> -> vector<8x32xf32>
    %95 = arith.truncf %94 : vector<8x32xf32> to vector<8x32xbf16>
    %c0_28 = arith.constant 0 : index
    %c0_29 = arith.constant 0 : index
    %96 = vector.load %arg9[%c0_28, %c0_29] : memref<32x32xbf16, #tpu.memory_space<vmem>>, vector<32x32xbf16>
    %cst_30 = arith.constant dense<0.000000e+00> : vector<8x32xf32>
    %97 = tpu.matmul %95, %96, %cst_30 {dimension_numbers = #tpu.dot_dimension_numbers<[1], [0], [0], [1], [0, 0, 1, 1], [], []>} : vector<8x32xbf16>, vector<32x32xbf16>, vector<8x32xf32> -> vector<8x32xf32>
    %c0_31 = arith.constant 0 : index
    %c0_32 = arith.constant 0 : index
    %98 = vector.load %arg10[%c0_31, %c0_32] : memref<1x32xf32, #tpu.memory_space<vmem>>, vector<1x32xf32>
    %99 = vector.broadcast %98 : vector<1x32xf32> to vector<8x32xf32>
    %100 = arith.addf %97, %99 : vector<8x32xf32>
    %101 = arith.addf %1, %100 : vector<8x32xf32>
    %c0_33 = arith.constant 0 : index
    %c0_34 = arith.constant 0 : index
    %c0_35 = arith.constant 0 : index
    %102 = vector.load %arg11[%c0_33, %c0_34, %c0_35] : memref<1x8x32xf32, #tpu.memory_space<vmem>>, vector<1x8x32xf32>
    %103 = vector.shape_cast %102 : vector<1x8x32xf32> to vector<8x32xf32>
    %104 = vector.shape_cast %101 : vector<8x32xf32> to vector<1x8x32xf32>
    tpu.vector_store %arg11[%c0_33, %c0_34, %c0_35], %104 {strides = array<i32>} : memref<1x8x32xf32, #tpu.memory_space<vmem>>, vector<1x8x32xf32>,
    return
  }
  func.func @transform_0(%arg0: i32) -> (i32, i32, i32) {
    %c0_i32 = arith.constant 0 : i32
    %c0_i32_0 = arith.constant 0 : i32
    %c0_i32_1 = arith.constant 0 : i32
    return %arg0, %c0_i32, %c0_i32_0 : i32, i32, i32
  }
  func.func @transform_1(%arg0: i32) -> (i32, i32, i32) {
    %c0_i32 = arith.constant 0 : i32
    %c0_i32_0 = arith.constant 0 : i32
    %c0_i32_1 = arith.constant 0 : i32
    return %arg0, %c0_i32, %c0_i32_0 : i32, i32, i32
  }
  func.func @transform_2(%arg0: i32) -> (i32, i32) {
    %c0_i32 = arith.constant 0 : i32
    %c0_i32_0 = arith.constant 0 : i32
    %c0_i32_1 = arith.constant 0 : i32
    return %c0_i32, %c0_i32_0 : i32, i32
  }
  func.func @transform_3(%arg0: i32) -> (i32, i32) {
    %c0_i32 = arith.constant 0 : i32
    %c0_i32_0 = arith.constant 0 : i32
    %c0_i32_1 = arith.constant 0 : i32
    return %c0_i32, %c0_i32_0 : i32, i32
  }
  func.func @transform_4(%arg0: i32) -> (i32, i32) {
    %c0_i32 = arith.constant 0 : i32
    %c0_i32_0 = arith.constant 0 : i32
    %c0_i32_1 = arith.constant 0 : i32
    return %c0_i32, %c0_i32_0 : i32, i32
  }
  func.func @transform_5(%arg0: i32) -> (i32, i32) {
    %c0_i32 = arith.constant 0 : i32
    %c0_i32_0 = arith.constant 0 : i32
    %c0_i32_1 = arith.constant 0 : i32
    return %c0_i32, %c0_i32_0 : i32, i32
  }
  func.func @transform_6(%arg0: i32) -> (i32, i32) {
    %c0_i32 = arith.constant 0 : i32
    %c0_i32_0 = arith.constant 0 : i32
    %c0_i32_1 = arith.constant 0 : i32
    return %c0_i32, %c0_i32_0 : i32, i32
  }
  func.func @transform_7(%arg0: i32) -> (i32, i32) {
    %c0_i32 = arith.constant 0 : i32
    %c0_i32_0 = arith.constant 0 : i32
    %c0_i32_1 = arith.constant 0 : i32
    return %c0_i32, %c0_i32_0 : i32, i32
  }
  func.func @transform_8(%arg0: i32) -> (i32, i32) {
    %c0_i32 = arith.constant 0 : i32
    %c0_i32_0 = arith.constant 0 : i32
    %c0_i32_1 = arith.constant 0 : i32
    return %c0_i32, %c0_i32_0 : i32, i32
  }
  func.func @transform_9(%arg0: i32) -> (i32, i32) {
    %c0_i32 = arith.constant 0 : i32
    %c0_i32_0 = arith.constant 0 : i32
    %c0_i32_1 = arith.constant 0 : i32
    return %c0_i32, %c0_i32_0 : i32, i32
  }
  func.func @transform_10(%arg0: i32) -> (i32, i32, i32) {
    %c0_i32 = arith.constant 0 : i32
    %c0_i32_0 = arith.constant 0 : i32
    %c0_i32_1 = arith.constant 0 : i32
    return %arg0, %c0_i32, %c0_i32_0 : i32, i32, i32
  }
}

module attributes {stable_mosaic.version = 11 : i64} {
  func.func @_ffn_kernel(%arg0: i32, %arg1: memref<16x32xf32, #tpu.memory_space<vmem>>, %arg2: memref<1x32xf32, #tpu.memory_space<vmem>>, %arg3: memref<1x32xf32, #tpu.memory_space<vmem>>, %arg4: memref<32x64xbf16, #tpu.memory_space<vmem>>, %arg5: memref<1x64xf32, #tpu.memory_space<vmem>>, %arg6: memref<64x32xbf16, #tpu.memory_space<vmem>>, %arg7: memref<1x32xf32, #tpu.memory_space<vmem>>, %arg8: memref<16x32xf32, #tpu.memory_space<vmem>>) attributes {dimension_semantics = [#tpu.dimension_semantics<parallel>], iteration_bounds = array<i64: 1>, scalar_prefetch = 0 : i64, scratch_operands = 0 : i64, tpu.core_type = #tpu.core_type<tc>, window_params = [{transform_indices = @transform_0, window_bounds = array<i64: 16, 32>}, {pipeline_mode = #tpu.pipeline_mode<synchronous>, transform_indices = @transform_1, window_bounds = array<i64: 1, 32>}, {pipeline_mode = #tpu.pipeline_mode<synchronous>, transform_indices = @transform_2, window_bounds = array<i64: 1, 32>}, {pipeline_mode = #tpu.pipeline_mode<synchronous>, transform_indices = @transform_3, window_bounds = array<i64: 32, 64>}, {pipeline_mode = #tpu.pipeline_mode<synchronous>, transform_indices = @transform_4, window_bounds = array<i64: 1, 64>}, {pipeline_mode = #tpu.pipeline_mode<synchronous>, transform_indices = @transform_5, window_bounds = array<i64: 64, 32>}, {pipeline_mode = #tpu.pipeline_mode<synchronous>, transform_indices = @transform_6, window_bounds = array<i64: 1, 32>}, {transform_indices = @transform_7, window_bounds = array<i64: 16, 32>}]} {
    %c0 = arith.constant 0 : index
    %c0_0 = arith.constant 0 : index
    %0 = vector.load %arg1[%c0, %c0_0] : memref<16x32xf32, #tpu.memory_space<vmem>>, vector<16x32xf32>
    %c0_1 = arith.constant 0 : index
    %c0_2 = arith.constant 0 : index
    %1 = vector.load %arg2[%c0_1, %c0_2] : memref<1x32xf32, #tpu.memory_space<vmem>>, vector<1x32xf32>
    %c0_3 = arith.constant 0 : index
    %c0_4 = arith.constant 0 : index
    %2 = vector.load %arg3[%c0_3, %c0_4] : memref<1x32xf32, #tpu.memory_space<vmem>>, vector<1x32xf32>
    %cst = arith.constant dense<0.000000e+00> : vector<16xf32>
    %3 = vector.multi_reduction <add>, %0, %cst [1] : vector<16x32xf32> to vector<16xf32>
    %4 = vector.shape_cast %3 : vector<16xf32> to vector<16x1xf32>
    %cst_5 = arith.constant 3.200000e+01 : f32
    %5 = vector.broadcast %cst_5 : f32 to vector<16x1xf32>
    %6 = arith.divf %4, %5 : vector<16x1xf32>
    %7 = vector.broadcast %6 : vector<16x1xf32> to vector<16x32xf32>
    %8 = arith.subf %0, %7 : vector<16x32xf32>
    %9 = arith.mulf %8, %8 : vector<16x32xf32>
    %cst_6 = arith.constant dense<0.000000e+00> : vector<16xf32>
    %10 = vector.multi_reduction <add>, %9, %cst_6 [1] : vector<16x32xf32> to vector<16xf32>
    %11 = vector.shape_cast %10 : vector<16xf32> to vector<16x1xf32>
    %cst_7 = arith.constant 3.200000e+01 : f32
    %12 = vector.broadcast %cst_7 : f32 to vector<16x1xf32>
    %13 = arith.divf %11, %12 : vector<16x1xf32>
    %14 = vector.broadcast %6 : vector<16x1xf32> to vector<16x32xf32>
    %15 = arith.subf %0, %14 : vector<16x32xf32>
    %cst_8 = arith.constant 9.99999974E-6 : f32
    %16 = vector.broadcast %cst_8 : f32 to vector<16x1xf32>
    %17 = arith.addf %13, %16 : vector<16x1xf32>
    %18 = math.rsqrt %17 : vector<16x1xf32>
    %19 = vector.broadcast %18 : vector<16x1xf32> to vector<16x32xf32>
    %20 = arith.mulf %15, %19 : vector<16x32xf32>
    %21 = vector.broadcast %1 : vector<1x32xf32> to vector<16x32xf32>
    %22 = arith.mulf %20, %21 : vector<16x32xf32>
    %23 = vector.broadcast %2 : vector<1x32xf32> to vector<16x32xf32>
    %24 = arith.addf %22, %23 : vector<16x32xf32>
    %25 = arith.truncf %24 : vector<16x32xf32> to vector<16x32xbf16>
    %c0_9 = arith.constant 0 : index
    %c0_10 = arith.constant 0 : index
    %26 = vector.load %arg4[%c0_9, %c0_10] : memref<32x64xbf16, #tpu.memory_space<vmem>>, vector<32x64xbf16>
    %cst_11 = arith.constant dense<0.000000e+00> : vector<16x64xf32>
    %27 = tpu.matmul %25, %26, %cst_11 {dimension_numbers = #tpu.dot_dimension_numbers<[1], [0], [0], [1], [0, 0, 1, 1], [], []>} : vector<16x32xbf16>, vector<32x64xbf16>, vector<16x64xf32> -> vector<16x64xf32>
    %c0_12 = arith.constant 0 : index
    %c0_13 = arith.constant 0 : index
    %28 = vector.load %arg5[%c0_12, %c0_13] : memref<1x64xf32, #tpu.memory_space<vmem>>, vector<1x64xf32>
    %29 = vector.broadcast %28 : vector<1x64xf32> to vector<16x64xf32>
    %30 = arith.addf %27, %29 : vector<16x64xf32>
    %cst_14 = arith.constant 0.000000e+00 : f32
    %31 = vector.broadcast %cst_14 : f32 to vector<16x64xf32>
    %32 = arith.maximumf %30, %31 : vector<16x64xf32>
    %33 = arith.truncf %32 : vector<16x64xf32> to vector<16x64xbf16>
    %c0_15 = arith.constant 0 : index
    %c0_16 = arith.constant 0 : index
    %34 = vector.load %arg6[%c0_15, %c0_16] : memref<64x32xbf16, #tpu.memory_space<vmem>>, vector<64x32xbf16>
    %cst_17 = arith.constant dense<0.000000e+00> : vector<16x32xf32>
    %35 = tpu.matmul %33, %34, %cst_17 {dimension_numbers = #tpu.dot_dimension_numbers<[1], [0], [0], [1], [0, 0, 1, 1], [], []>} : vector<16x64xbf16>, vector<64x32xbf16>, vector<16x32xf32> -> vector<16x32xf32>
    %c0_18 = arith.constant 0 : index
    %c0_19 = arith.constant 0 : index
    %36 = vector.load %arg7[%c0_18, %c0_19] : memref<1x32xf32, #tpu.memory_space<vmem>>, vector<1x32xf32>
    %37 = vector.broadcast %36 : vector<1x32xf32> to vector<16x32xf32>
    %38 = arith.addf %35, %37 : vector<16x32xf32>
    %39 = arith.addf %0, %38 : vector<16x32xf32>
    %c0_20 = arith.constant 0 : index
    %c0_21 = arith.constant 0 : index
    %40 = vector.load %arg8[%c0_20, %c0_21] : memref<16x32xf32, #tpu.memory_space<vmem>>, vector<16x32xf32>
    tpu.vector_store %arg8[%c0_20, %c0_21], %39 {strides = array<i32>} : memref<16x32xf32, #tpu.memory_space<vmem>>, vector<16x32xf32>,
    return
  }
  func.func @transform_0(%arg0: i32) -> (i32, i32) {
    %c0_i32 = arith.constant 0 : i32
    %c0_i32_0 = arith.constant 0 : i32
    return %arg0, %c0_i32 : i32, i32
  }
  func.func @transform_1(%arg0: i32) -> (i32, i32) {
    %c0_i32 = arith.constant 0 : i32
    %c0_i32_0 = arith.constant 0 : i32
    %c0_i32_1 = arith.constant 0 : i32
    return %c0_i32, %c0_i32_0 : i32, i32
  }
  func.func @transform_2(%arg0: i32) -> (i32, i32) {
    %c0_i32 = arith.constant 0 : i32
    %c0_i32_0 = arith.constant 0 : i32
    %c0_i32_1 = arith.constant 0 : i32
    return %c0_i32, %c0_i32_0 : i32, i32
  }
  func.func @transform_3(%arg0: i32) -> (i32, i32) {
    %c0_i32 = arith.constant 0 : i32
    %c0_i32_0 = arith.constant 0 : i32
    %c0_i32_1 = arith.constant 0 : i32
    return %c0_i32, %c0_i32_0 : i32, i32
  }
  func.func @transform_4(%arg0: i32) -> (i32, i32) {
    %c0_i32 = arith.constant 0 : i32
    %c0_i32_0 = arith.constant 0 : i32
    %c0_i32_1 = arith.constant 0 : i32
    return %c0_i32, %c0_i32_0 : i32, i32
  }
  func.func @transform_5(%arg0: i32) -> (i32, i32) {
    %c0_i32 = arith.constant 0 : i32
    %c0_i32_0 = arith.constant 0 : i32
    %c0_i32_1 = arith.constant 0 : i32
    return %c0_i32, %c0_i32_0 : i32, i32
  }
  func.func @transform_6(%arg0: i32) -> (i32, i32) {
    %c0_i32 = arith.constant 0 : i32
    %c0_i32_0 = arith.constant 0 : i32
    %c0_i32_1 = arith.constant 0 : i32
    return %c0_i32, %c0_i32_0 : i32, i32
  }
  func.func @transform_7(%arg0: i32) -> (i32, i32) {
    %c0_i32 = arith.constant 0 : i32
    %c0_i32_0 = arith.constant 0 : i32
    return %arg0, %c0_i32 : i32, i32
  }
}

</mosaic_0001>

<bundles_post_ra>
// kernel: transformer_decoder_layer.5
= control target key start
LH: loop header
LB: loop body
LE: loop exit
PB: predicated region body
PF: predicated region fallthrough
CT: control target
= control target key end

     0   :  { %vm31_vm0 = vcmask 261120   ;;  %v290_v15 = vmov 0.0   ;;  %vm291_vm1 = vmmov 0   ;;  %vm185_vm2 = vcmask 523264   ;;  %s391_s0 = inlined_call_operand.vmem [shape: f32[16,32], index: 0, kind: input, shape index: {}]   ;;  %s392_s3 = inlined_call_operand.vmem [shape: bf16[32,64], index: 3, kind: input, shape index: {}]   ;;  %s393_s5 = inlined_call_operand.vmem [shape: bf16[64,32], index: 5, kind: input, shape index: {}]   ;;  %s394_s1 = inlined_call_operand.vmem [shape: f32[1,32], index: 1, kind: input, shape index: {}]   ;;  %s395_s2 = inlined_call_operand.vmem [shape: f32[1,32], index: 2, kind: input, shape index: {}]   ;;  %s396_s4 = inlined_call_operand.vmem [shape: f32[1,64], index: 4, kind: input, shape index: {}]   ;;  %s397_s6 = inlined_call_operand.vmem [shape: f32[1,32], index: 6, kind: input, shape index: {}]   ;;  %s398_s7 = inlined_call_operand.vmem [shape: f32[16,32], index: 7, kind: output, shape index: {}]  }
   0x1   :  { %v335_v0 = vld [vmem:[%s391_s0] sm:$0xff]  ;;  %v340_v1 = vld [vmem:[%s391_s0 + $0x8] sm:$0xff]  ;;  %258 = vmatprep.subr.bf16.mxu0 %v290_v15  ;;  %266 = vmatprep.subr.bf16.mxu1 %v290_v15  ;;  %v284_v36 = vld [vmem:[%s393_s5 + $0x10] sm:$0xff]  }
   0x2   :  { %v32_v2 = vsel %vm31_vm0, %v335_v0, 0.0  ;;  %v35_v3 = vsel %vm31_vm0, %v340_v1, 0.0  ;;  %v280_v14 = vld [vmem:[%s392_s3] sm:$0xff]   ;;  %v281_v16 = vld [vmem:[%s392_s3 + $0x8] sm:$0xff]   ;;  %262 = vmatprep.mubr.msk.bf16.mxu0 %vm291_vm1, %v290_v15  ;;  %274 = vmatprep.mubr.msk.bf16.mxu1 %vm291_vm1, %v290_v15  ;;  %v285_v37 = vld [vmem:[%s393_s5 + $0x18] sm:$0xff]  }
   0x3   :  { %33 = vadd.xlane.f32.xlu0 %v32_v2  ;;  %259 = vmatpush3.bf16.msra.mxu0 %v280_v14  ;;  %v282_v17 = vld [vmem:[%s393_s5] sm:$0xff]   ;;  %v283_v18 = vld [vmem:[%s393_s5 + $0x8] sm:$0xff]  }
   0x4   :  { %260 = vmatprep.subr.bf16.mxu0 %v290_v15  ;;  %267 = vmatpush3.bf16.msra.mxu1 %v282_v17  ;;  %v238_v27 = vld [vmem:[%s394_s1] ss:$0 sm:$0xff] }
   0x5   :  { %268 = vmatprep.subr.bf16.mxu1 %v290_v15  ;;  %v239_v31 = vld [vmem:[%s395_s2] ss:$0 sm:$0xff] }
   0x6   :  { %v240_v38 = vld [vmem:[%s396_s4] ss:$0 sm:$0xff] }
   0x7   :  { %36 = vadd.xlane.f32.xlu0 %v35_v3  ;;  %261 = vmatpush3.bf16.msra.mxu0 %v281_v16  ;;  %v244_v48 = vld [vmem:[%s397_s6] ss:$0 sm:$0xff] }
   0x8   :  { %269 = vmatpush3.bf16.msra.mxu1 %v283_v18 }
   0x9   :  { %270 = vmatprep.subr.bf16.mxu1 %v290_v15 }
   0xc   :  { %271 = vmatpush3.bf16.msra.mxu1 %v284_v36 }
   0xd   :  { %272 = vmatprep.subr.bf16.mxu1 %v290_v15 }
  0x10   :  { %273 = vmatpush3.bf16.msra.mxu1 %v285_v37 }
  0x90   :  { %v34_v4 = vpop.xlane.xlu0 %33 }
  0x91   :  { %v39_v5 = vmul.f32 0.03125, %v34_v4 }
  0x93   :  { %v41_v6 = vsub.f32 %v335_v0, %v39_v5 }
  0x94   :  { %v37_v7 = vpop.xlane.xlu0 %36 }
  0x95   :  { %v40_v8 = vmul.f32 0.03125, %v37_v7  ;;  %v43_v9 = vmul.f32 %v41_v6, %v41_v6 }
  0x97   :  { %v42_v10 = vsub.f32 %v340_v1, %v40_v8  ;;  %v45_v11 = vsel %vm31_vm0, %v43_v9, 0.0 }
  0x98   :  { %46 = vadd.xlane.f32.xlu1 %v45_v11 }
  0x99   :  { %v44_v12 = vmul.f32 %v42_v10, %v42_v10 }
  0x9b   :  { %v48_v13 = vsel %vm31_vm0, %v44_v12, 0.0 }
  0x9c   :  { %49 = vadd.xlane.f32.xlu1 %v48_v13 }
 0x125   :  { %v47_v19 = vpop.xlane.xlu1 %46 }
 0x126   :  { %v51_v20 = vmul.f32 0.03125, %v47_v19 }
 0x128   :  { %v53_v21 = vadd.f32 1e-05, %v51_v20 }
 0x129   :  { %v50_v22 = vpop.xlane.xlu1 %49 }
 0x12a   :  { %286 = vrsqrt.f32 %v53_v21  ;;  %v52_v23 = vmul.f32 0.03125, %v50_v22 }
 0x12c   :  { %v54_v24 = vadd.f32 1e-05, %v52_v23 }
 0x12e   :  { %288 = vrsqrt.f32 %v54_v24 }
 0x134   :  { %v287_v25 = vpop.eup %286 }
 0x135   :  { %v57_v26 = vmul.f32 %v287_v25, %v41_v6 }
 0x137   :  { %v65_v30 = vmul.f32 %v238_v27, %v57_v26 }
 0x138   :  { %v289_v28 = vpop.eup %288 }
 0x139   :  { %v58_v29 = vmul.f32 %v289_v28, %v42_v10  ;;  %v73_v33 = vadd.f32 %v239_v31, %v65_v30 }
 0x13b   :  { %v66_v32 = vmul.f32 %v238_v27, %v58_v29 }
 0x13d   :  { %v74_v34 = vadd.f32 %v239_v31, %v66_v32 }
 0x13f   :  { %v75_v35 = vpack.c.bf16 %v74_v34, %v73_v33 }
 0x141   :  { %263 = vmatmul.mubr.msk.bf16.vlgmr.msra.gmra.mrb[0].mxu0 %vm31_vm0, %v75_v35 }
 0x214   :  { %v136_v39 = vpop.f32.mrb[0].mxu0 }
 0x215   :  { %v137_v40 = vadd.f32 %v240_v38, %v136_v39  ;;  %v264_v41 = vpop.f32.mrb[1].mxu0 }
 0x216   :  { %v139_v42 = vpop.f32.mrb[2].mxu0 }
 0x217   :  { %v140_v43 = vadd.f32 %v240_v38, %v139_v42  ;;  %v265_v44 = vpop.f32.mrb[3].mxu0  ;;  %v143_v45 = vmax.f32 %v137_v40, 0.0 }
 0x219   :  { %v144_v46 = vmax.f32 %v140_v43, 0.0 }
 0x21b   :  { %v145_v47 = vpack.c.bf16 %v144_v46, %v143_v45 }
 0x21d   :  { %275 = vmatmul.mubr.msk.bf16.vlgmr.msra.gmra.mrb[0].mxu1 %vm185_vm2, %v145_v47 }
 0x2f0   :  { %v223_v49 = vpop.f32.mrb[0].mxu1 }
 0x2f1   :  { %v224_v50 = vadd.f32 %v244_v48, %v223_v49  ;;  %v276_v51 = vpop.f32.mrb[1].mxu1 }
 0x2f2   :  { %v226_v52 = vpop.f32.mrb[2].mxu1 }
 0x2f3   :  { %v230_v53 = vadd.f32 %v224_v50, %v335_v0  ;;  %v227_v54 = vadd.f32 %v244_v48, %v226_v52  ;;  %v277_v55 = vpop.f32.mrb[3].mxu1 }
 0x2f5   :  { %232 = vst.msk [vmem:[%s398_s7] sm:$0xff] %vm31_vm0, %v230_v53  ;;  %v231_v56 = vadd.f32 %v227_v54, %v340_v1 }
 0x2f7   :  { %233 = vst.msk [vmem:[%s398_s7 + $0x8] sm:$0xff] %vm31_vm0, %v231_v56 }

// kernel: transformer_decoder_layer.4
= control target key start
LH: loop header
LB: loop body
LE: loop exit
PB: predicated region body
PF: predicated region fallthrough
CT: control target
= control target key end

     0   :  { %s1425_s13 = smov 0   ;;  %s1578_s0 = inlined_call_operand.vmem [shape: f32[2,8,32], index: 0, kind: input, shape index: {}]   ;;  %s1579_s1 = inlined_call_operand.vmem [shape: f32[2,10,32], index: 1, kind: input, shape index: {}]   ;;  %s1580_s2 = inlined_call_operand.vmem [shape: f32[1,32], index: 2, kind: input, shape index: {}]   ;;  %s1581_s3 = inlined_call_operand.vmem [shape: f32[1,32], index: 3, kind: input, shape index: {}]   ;;  %s1582_s4 = inlined_call_operand.vmem [shape: bf16[32,32], index: 4, kind: input, shape index: {}]   ;;  %s1583_s5 = inlined_call_operand.vmem [shape: f32[1,32], index: 5, kind: input, shape index: {}]   ;;  %s1584_s6 = inlined_call_operand.vmem [shape: bf16[32,64], index: 6, kind: input, shape index: {}]   ;;  %s1585_s7 = inlined_call_operand.vmem [shape: f32[1,64], index: 7, kind: input, shape index: {}]   ;;  %s1586_s8 = inlined_call_operand.vmem [shape: bf16[32,32], index: 8, kind: input, shape index: {}]   ;;  %s1587_s9 = inlined_call_operand.vmem [shape: f32[1,32], index: 9, kind: input, shape index: {}]   ;;  %s1588_s10 = inlined_call_operand.vmem [shape: f32[2,8,32], index: 10, kind: output, shape index: {}]  }
   0x1 LB: > { %s1166_s14 = sadd.s32 4294967295, %s1359_s13   ;;  %p1170_p0 = scmp.ge.s32.totalorder %s1359_s13, 1  ;;  %s1359_s13 = sphi %s1425_s13, %s20_s13  }
   0x2   : > { %p321_p1 = scmp.lt.s32.totalorder %s1359_s13, 3 }
   0x4   : > { %p322_p2 = pnand %p1170_p0, %p321_p1 }
   0x5   : > { %p362_p3 = scmp.lt.s32.totalorder (!%p322_p2), %s1166_s14, 1  ;;  %vm381_vm0 = vcmask (!%p322_p2), 261120   ;;  %v1329_v2 = vld [vmem:[%s1584_s6] sm:$0xff] (!%p322_p2)   ;;  %v1361_v3 = vmov (!%p322_p2), 0.0   ;;  %vm1362_vm1 = vmmov (!%p322_p2), 0   ;;  %v1330_v4 = vld [vmem:[%s1584_s6 + $0x8] sm:$0xff] (!%p322_p2)  }
   0x6   : > { %325 = sbr.rel (%p322_p2) target bundleno = 1748 (0x6d4), region = 60  ;;  %1233 = vmatprep.subr.bf16.mxu1 (!%p322_p2), %v1361_v3  ;;  %1237 = vmatprep.mubr.msk.bf16.mxu1 (!%p322_p2), %vm1362_vm1, %v1361_v3  ;;  %v1331_v13 = vld [vmem:[%s1582_s4] sm:$0xff] (!%p322_p2)   ;;  %v1332_v14 = vld [vmem:[%s1582_s4 + $0x8] sm:$0xff] (!%p322_p2)   ;;  %vm584_vm2 = vcmask (!%p322_p2), 64512   ;;  %s1363_s20 = smov (!%p322_p2), 120   ;;  %vm769_vm3 = vcmask (!%p322_p2), 80896  }
   0x7   : > { %1234 = vmatpush3.bf16.msra.mxu1 (!%p322_p2), %v1329_v2  ;;  %1225 = vmatprep.subr.bf16.mxu0 (!%p322_p2), %v1361_v3  ;;  %v1175_v19 = vld [vmem:[%s1580_s2] ss:$0 sm:$0xff] (!%p322_p2)  ;;  %s1364_s21 = smov (!%p322_p2), 112   ;;  %s1365_s22 = smov (!%p322_p2), 104   ;;  %vm824_vm4 = vcmask (!%p322_p2), 1044480   ;;  %vm1028_vm5 = vcmask (!%p322_p2), 130048  }
   0x8   : > { %1235 = vmatprep.subr.bf16.mxu1 (!%p322_p2), %v1361_v3  ;;  %1229 = vmatprep.mubr.msk.bf16.mxu0 (!%p322_p2), %vm1362_vm1, %v1361_v3  ;;  %v1176_v21 = vld [vmem:[%s1581_s3] ss:$0 sm:$0xff] (!%p322_p2)  ;;  %s1366_s25 = smov (!%p322_p2), 96   ;;  %s1367_s30 = smov (!%p322_p2), 8   ;;  %vm1030_vm6 = vcmask (!%p322_p2), 195584  }
   0x9   : > { %1226 = vmatpush3.bf16.msra.mxu0 (!%p322_p2), %v1331_v13  ;;  %v1181_v25 = vld [vmem:[%s1585_s7] ss:$0 sm:$0xff] (!%p322_p2)  ;;  %s1368_s11 = smov (!%p322_p2), 16   ;;  %s1369_s12 = smov (!%p322_p2), 24  }
   0xa   : > { %1227 = vmatprep.subr.bf16.mxu0 (!%p322_p2), %v1361_v3  ;;  %v1177_v43 = vld [vmem:[%s1583_s5] ss:$0 sm:$0xff] (!%p322_p2) }
   0xb   : > { %1236 = vmatpush3.bf16.msra.mxu1 (!%p322_p2), %v1330_v4 }
   0xc   : > { %1247 = vmatprep.subr.bf16.mxu1 (!%p322_p2), %v1361_v3 }
   0xd   : > { %s1590_s14 = smov (!%p362_p3, %s1166_s14), 1  ;;  %1228 = vmatpush3.bf16.msra.mxu0 %v1332_v14 }
   0xe   : > { %s1171_s15 = sshll.u32 %s1590_s14, 3  ;;  %s1199_s23 = sshll.u32 %s1590_s14, 4  ;;  %1241 = vmatprep.subr.bf16.mxu0 %v1361_v3 }
   0xf   : > { %s365_s18 = scalar_lea.vmem %s1578_s0, %s1171_s15  ;;  %s370_s26 = scalar_lea.vmem %s1579_s1, %s1199_s23 }
  0x10   : > { %v1441_v0 = vld [vmem:[%s365_s18] sm:$0xff]  ;;  %v378_v11 = vld [vmem:[%s370_s26 + $0x8] sm:$0x3] }
  0x11   : > { %v382_v1 = vsel %vm381_vm0, %v1441_v0, 0.0  ;;  %v377_v10 = vld [vmem:[%s370_s26] sm:$0xff] }
  0x12   : > { %383 = vadd.xlane.f32.xlu0 %v382_v1  ;;  %v478_v12 = vpack.c.bf16 %v378_v11, %v377_v10 }
  0x14   : > { %1238 = vmatmul.mubr.msk.bf16.vlgmr.msra.gmra.mrb[0].mxu1 %vm381_vm0, %v478_v12 }
  0x15   : > { %1249 = vmatprep.mubr.msk.bf16.mxu1 %vm1362_vm1, %v1361_v3 }
  0x9f   : > { %v384_v5 = vpop.xlane.xlu0 %383 }
  0xa0   : > { %v386_v6 = vmul.f32 0.03125, %v384_v5 }
  0xa2   : > { %v387_v7 = vsub.f32 %v1441_v0, %v386_v6 }
  0xa4   : > { %v388_v8 = vmul.f32 %v387_v7, %v387_v7 }
  0xa6   : > { %v389_v9 = vsel %vm381_vm0, %v388_v8, 0.0 }
  0xa7   : > { %390 = vadd.xlane.f32.xlu0 %v389_v9 }
  0xe7   : > { %v539_v26 = vpop.f32.mrb[0].mxu1 }
  0xe8   : > { %v540_v27 = vadd.f32 %v1181_v25, %v539_v26  ;;  %v1239_v28 = vpop.f32.mrb[1].mxu1 }
  0xe9   : > { %v542_v29 = vpop.f32.mrb[2].mxu1 }
  0xea   : > { %v543_v30 = vadd.f32 %v1181_v25, %v542_v29  ;;  %v1240_v31 = vpop.f32.mrb[3].mxu1 }
  0xec   : > { %v1314_v32 = vpack.i.bf16 %v543_v30, %v540_v27  ;;  %v1488_v33 = vpack.c.bf16 %v543_v30, %v540_v27 }
  0xee   : > { %1315 = vrot.lane.b32.xlu1 %v1314_v32, %s1363_s20  ;;  %v589_v34 = vsel %vm584_vm2, %v1488_v33, 0 }
  0xf2   : > { %1320 = vrot.lane.b32.xlu1 %v1314_v32, %s1364_s21 }
  0xf6   : > { %1325 = vrot.lane.b32.xlu1 %v1314_v32, %s1365_s22 }
 0x134   : > { %v391_v15 = vpop.xlane.xlu0 %390 }
 0x135   : > { %v392_v16 = vmul.f32 0.03125, %v391_v15 }
 0x137   : > { %v393_v17 = vadd.f32 1e-05, %v392_v16 }
 0x139   : > { %1335 = vrsqrt.f32 %v393_v17 }
 0x143   : > { %v1336_v18 = vpop.eup %1335 }
 0x144   : > { %v395_v20 = vmul.f32 %v1336_v18, %v387_v7 }
 0x146   : > { %v402_v22 = vmul.f32 %v1175_v19, %v395_v20 }
 0x148   : > { %v409_v23 = vadd.f32 %v1176_v21, %v402_v22 }
 0x14a   : > { %v410_v24 = vpack.c.bf16 %v409_v23, %v409_v23 }
 0x14c   : > { %1230 = vmatmul.mubr.msk.bf16.vlgmr.msra.gmra.mrb[0].mxu0 %vm381_vm0, %v410_v24 }
 0x14d   : > { %1243 = vmatprep.mubr.msk.bf16.mxu0 %vm1362_vm1, %v1361_v3  ;;  %1242 = vmatpush3.bf16.xpose.msra.mxu0 %v589_v34 }
 0x14e   : > { %1253 = vmatprep.subr.bf16.mxu0 %v1361_v3 }
 0x160   : > { %v1316_v35 = vpop.permute.xlu1 %1315 }
 0x161   : > { %v1318_v36 = vunpack.i.h.bf16 %v1316_v35  ;;  %v1317_v37 = vunpack.i.l.bf16 %v1316_v35 }
 0x163   : > { %v1493_v38 = vpack.c.bf16 %v1318_v36, %v1317_v37 }
 0x164   : > { %v1321_v40 = vpop.permute.xlu1 %1320 }
 0x165   : > { %v635_v39 = vsel %vm584_vm2, %v1493_v38, 0  ;;  %v1323_v41 = vunpack.i.h.bf16 %v1321_v40  ;;  %v1322_v42 = vunpack.i.l.bf16 %v1321_v40 }
 0x166   : > { %1248 = vmatpush3.bf16.xpose.msra.mxu1 %v635_v39 }
 0x167   : > { %1259 = vmatprep.subr.bf16.mxu1 %v1361_v3  ;;  %v1501_v47 = vpack.c.bf16 %v1323_v41, %v1322_v42 }
 0x168   : > { %v1326_v53 = vpop.permute.xlu1 %1325 }
 0x169   : > { %v681_v52 = vsel %vm584_vm2, %v1501_v47, 0  ;;  %v1328_v54 = vunpack.i.h.bf16 %v1326_v53  ;;  %v1327_v55 = vunpack.i.l.bf16 %v1326_v53 }
 0x16b   : > { %v1509_v56 = vpack.c.bf16 %v1328_v54, %v1327_v55 }
 0x16d   : > { %v727_v61 = vsel %vm584_vm2, %v1509_v56, 0 }
 0x21f   : > { %v471_v44 = vpop.f32.mrb[0].mxu0 }
 0x220   : > { %v472_v45 = vadd.f32 %v1177_v43, %v471_v44  ;;  %v1231_v46 = vpop.f32.mrb[1].mxu0 }
 0x221   : > { %v474_v48 = vpop.f32.mrb[2].mxu0 }
 0x222   : > { %v477_v49 = vmul.f32 0.35355338, %v472_v45  ;;  %v1232_v50 = vpop.f32.mrb[3].mxu0 }
 0x224   : > { %v556_v51 = vpack.c.bf16 %v477_v49, %v477_v49  ;;  %550 = vrot.lane.b32.xlu1 %v477_v49, %s1364_s21  ;;  %547 = vrot.lane.b32.xlu0 %v477_v49, %s1363_s20  ;;  %s374_s20 = scalar_lea.vmem %s1588_s10, %s1171_s15 }
 0x226   : > { %1244 = vmatmul.mubr.msk.bf16.vlgmr.msra.gmra.mrb[4].mxu0 %vm584_vm2, %v556_v51 }
 0x227   : > { %1254 = vmatpush3.bf16.xpose.msra.mxu0 %v681_v52  ;;  %1255 = vmatprep.mubr.msk.bf16.mxu0 %vm1362_vm1, %v1361_v3 }
 0x228   : > { %553 = vrot.lane.b32.xlu1 %v477_v49, %s1365_s22  ;;  %1265 = vmatprep.subr.bf16.mxu0 %v1361_v3 }
 0x296   : > { %v551_v57 = vpop.permute.xlu1 %550  ;;  %v548_v58 = vpop.permute.xlu0 %547 }
 0x297   : > { %v558_v59 = vpack.c.bf16 %v551_v57, %v551_v57  ;;  %v557_v60 = vpack.c.bf16 %v548_v58, %v548_v58 }
 0x299   : > { %1250 = vmatmul.mubr.msk.bf16.vlgmr.msra.gmra.mrb[4].mxu1 %vm584_vm2, %v557_v60  ;;  %1256 = vmatmul.mubr.msk.bf16.vlgmr.msra.gmra.mrb[8].mxu0 %vm584_vm2, %v558_v59 }
 0x29a   : > { %1260 = vmatpush3.bf16.xpose.msra.mxu1 %v727_v61  ;;  %1261 = vmatprep.mubr.msk.bf16.mxu1 %vm1362_vm1, %v1361_v3  ;;  %v554_v62 = vpop.permute.xlu1 %553 }
 0x29b   : > { %1271 = vmatprep.subr.bf16.mxu1 %v1361_v3  ;;  %1267 = vmatprep.mubr.msk.bf16.mxu0 %vm1362_vm1, %v1361_v3  ;;  %v559_v63 = vpack.c.bf16 %v554_v62, %v554_v62 }
 0x2a1   : > { %1262 = vmatmul.mubr.msk.bf16.vlgmr.msra.gmra.mrb[8].mxu1 %vm584_vm2, %v559_v63 }
 0x2a2   : > { %1273 = vmatprep.mubr.msk.bf16.mxu1 %vm1362_vm1, %v1361_v3 }
 0x2f9   : > { %v625_v1 = vpop.f32.mrb[4].mxu0 }
 0x2fa   : > { %v1245_v2 = vpop.f32.mrb[5].mxu0  ;;  %v770_v4 = vsel %vm769_vm3, %v625_v1, -inf }
 0x2fb   : > { %771 = vmax.xlane.f32.xlu1 %v770_v4  ;;  %v628_v5 = vpop.f32.mrb[6].mxu0 }
 0x2fc   : > { %v1246_v6 = vpop.f32.mrb[7].mxu0 }
 0x36c   : > { %v671_v7 = vpop.f32.mrb[4].mxu1  ;;  %v717_v8 = vpop.f32.mrb[8].mxu0 }
 0x36d   : > { %v1251_v9 = vpop.f32.mrb[5].mxu1  ;;  %v1257_v10 = vpop.f32.mrb[9].mxu0  ;;  %v773_v11 = vsel %vm769_vm3, %v671_v7, -inf  ;;  %v776_v12 = vsel %vm769_vm3, %v717_v8, -inf }
 0x36e   : > { %774 = vmax.xlane.f32.xlu0 %v773_v11  ;;  %v674_v13 = vpop.f32.mrb[6].mxu1  ;;  %777 = vmax.xlane.f32.xlu1 %v776_v12  ;;  %v720_v14 = vpop.f32.mrb[10].mxu0  ;;  %v1334_v9 = vld [vmem:[%s1586_s8 + $0x8] sm:$0xff]  }
 0x36f   : > { %v1252_v15 = vpop.f32.mrb[7].mxu1  ;;  %v1258_v16 = vpop.f32.mrb[11].mxu0 }
 0x374   : > { %v763_v17 = vpop.f32.mrb[8].mxu1 }
 0x375   : > { %v1263_v18 = vpop.f32.mrb[9].mxu1  ;;  %v779_v19 = vsel %vm769_vm3, %v763_v17, -inf }
 0x376   : > { %v766_v20 = vpop.f32.mrb[10].mxu1  ;;  %780 = vmax.xlane.f32.xlu1 %v779_v19 }
 0x377   : > { %v1264_v21 = vpop.f32.mrb[11].mxu1 }
 0x384   : > { %819 = vrot.lane.b32.xlu0 %v1488_v33, %s1366_s25 }
 0x387   : > { %869 = vrot.lane.b32.xlu1 %v1493_v38, %s1366_s25 }
 0x388   : > { %v772_v22 = vpop.xlane.xlu1 %771 }
 0x389   : > { %v782_v23 = vsub.f32 %v625_v1, %v772_v22 }
 0x38b   : > { %v786_v24 = vmul.f32 1.442695, %v782_v23 }
 0x38d   : > { %1337 = vpow2.f32 %v786_v24 }
 0x397   : > { %v1338_v25 = vpop.eup %1337 }
 0x398   : > { %v794_v26 = vsel %vm769_vm3, %v1338_v25, 0.0 }
 0x3a3   : > { %795 = vadd.xlane.f32.xlu0 %v794_v26 }
 0x3fb   : > { %v775_v27 = vpop.xlane.xlu0 %774  ;;  %v778_v28 = vpop.xlane.xlu1 %777 }
 0x3fc   : > { %v783_v29 = vsub.f32 %v671_v7, %v775_v27  ;;  %v784_v30 = vsub.f32 %v717_v8, %v778_v28  ;;  %v1333_v8 = vld [vmem:[%s1586_s8] sm:$0xff]  }
 0x3fd   : > { %v1193_v28 = vld [vmem:[%s1587_s9] ss:$0 sm:$0xff] }
 0x3fe   : > { %v788_v31 = vmul.f32 1.442695, %v783_v29  ;;  %v790_v32 = vmul.f32 1.442695, %v784_v30 }
 0x3ff   : > { %v820_v34 = vpop.permute.xlu0 %819 }
 0x400   : > { %1339 = vpow2.f32 %v788_v31  ;;  %v826_v33 = vsel %vm824_vm4, %v820_v34, 0 }
 0x401   : > { %1341 = vpow2.f32 %v790_v32  ;;  %1266 = vmatpush3.bf16.msra.mxu0 %v826_v33 }
 0x402   : > { %1277 = vmatprep.subr.bf16.mxu0 %v1361_v3 }
 0x403   : > { %v781_v35 = vpop.xlane.xlu1 %780 }
 0x404   : > { %v785_v36 = vsub.f32 %v763_v17, %v781_v35 }
 0x406   : > { %v792_v37 = vmul.f32 1.442695, %v785_v36 }
 0x407   : > { %v870_v38 = vpop.permute.xlu1 %869 }
 0x408   : > { %1343 = vpow2.f32 %v792_v37  ;;  %v875_v39 = vsel %vm824_vm4, %v870_v38, 0 }
 0x409   : > { %1272 = vmatpush3.bf16.msra.mxu1 %v875_v39 }
 0x40a   : > { %v1340_v40 = vpop.eup %1339  ;;  %1283 = vmatprep.subr.bf16.mxu1 %v1361_v3 }
 0x40b   : > { %v1342_v41 = vpop.eup %1341  ;;  %v797_v42 = vsel %vm769_vm3, %v1340_v40, 0.0 }
 0x40c   : > { %798 = vadd.xlane.f32.xlu1 %v797_v42  ;;  %v800_v43 = vsel %vm769_vm3, %v1342_v41, 0.0 }
 0x40d   : > { %801 = vadd.xlane.f32.xlu0 %v800_v43 }
 0x412   : > { %v1344_v44 = vpop.eup %1343 }
 0x413   : > { %v803_v45 = vsel %vm769_vm3, %v1344_v44, 0.0 }
 0x414   : > { %804 = vadd.xlane.f32.xlu1 %v803_v45 }
 0x423   : > { %967 = vrot.lane.b32.xlu0 %v1509_v56, %s1366_s25 }
 0x425   : > { %918 = vrot.lane.b32.xlu1 %v1501_v47, %s1366_s25 }
 0x430   : > { %v796_v46 = vpop.xlane.xlu0 %795 }
 0x431   : > { %1345 = vrcp.f32 %v796_v46 }
 0x43b   : > { %v1346_v48 = vpop.eup %1345 }
 0x43c   : > { %v807_v49 = vmul.f32 %v1346_v48, %v1338_v25 }
 0x43e   : > { %v814_v50 = vpack.c.bf16 %v807_v49, %v807_v49 }
 0x440   : > { %1268 = vmatmul.mubr.msk.bf16.vlgmr.msra.gmra.mrb[12].mxu0 %vm769_vm3, %v814_v50 }
 0x441   : > { %1279 = vmatprep.mubr.msk.bf16.mxu0 %vm1362_vm1, %v1361_v3 }
 0x499   : > { %v799_v51 = vpop.xlane.xlu1 %798 }
 0x49a   : > { %v802_v52 = vpop.xlane.xlu0 %801  ;;  %1347 = vrcp.f32 %v799_v51 }
 0x49b   : > { %1349 = vrcp.f32 %v802_v52 }
 0x49e   : > { %v968_v58 = vpop.permute.xlu0 %967 }
 0x49f   : > { %v973_v62 = vsel %vm824_vm4, %v968_v58, 0 }
 0x4a1   : > { %v805_v53 = vpop.xlane.xlu1 %804 }
 0x4a2   : > { %1351 = vrcp.f32 %v805_v53 }
 0x4a4   : > { %v1348_v54 = vpop.eup %1347 }
 0x4a5   : > { %v1350_v55 = vpop.eup %1349  ;;  %v809_v56 = vmul.f32 %v1348_v54, %v1340_v40  ;;  %v919_v47 = vpop.permute.xlu1 %918 }
 0x4a6   : > { %v811_v57 = vmul.f32 %v1350_v55, %v1342_v41  ;;  %v924_v59 = vsel %vm824_vm4, %v919_v47, 0 }
 0x4a7   : > { %1278 = vmatpush3.bf16.msra.mxu0 %v924_v59  ;;  %v815_v60 = vpack.c.bf16 %v809_v56, %v809_v56 }
 0x4a8   : > { %v816_v61 = vpack.c.bf16 %v811_v57, %v811_v57  ;;  %1289 = vmatprep.subr.bf16.mxu0 %v1361_v3 }
 0x4a9   : > { %1274 = vmatmul.mubr.msk.bf16.vlgmr.msra.gmra.mrb[12].mxu1 %vm769_vm3, %v815_v60 }
 0x4aa   : > { %1284 = vmatpush3.bf16.msra.mxu1 %v973_v62  ;;  %1280 = vmatmul.mubr.msk.bf16.vlgmr.msra.gmra.mrb[16].mxu0 %vm769_vm3, %v816_v61 }
 0x4ab   : > { %1285 = vmatprep.mubr.msk.bf16.mxu1 %vm1362_vm1, %v1361_v3  ;;  %1293 = vmatprep.mubr.msk.bf16.mxu0 %vm1362_vm1, %v1361_v3 }
 0x4ac   : > { %v1352_v63 = vpop.eup %1351  ;;  %1290 = vmatpush3.bf16.msra.mxu0 %v1333_v8 }
 0x4ad   : > { %v813_v1 = vmul.f32 %v1352_v63, %v1344_v44  ;;  %1291 = vmatprep.subr.bf16.mxu0 %v1361_v3 }
 0x4af   : > { %v817_v2 = vpack.c.bf16 %v813_v1, %v813_v1 }
 0x4b0   : > { %1292 = vmatpush3.bf16.msra.mxu0 %v1334_v9 }
 0x4b1   : > { %1286 = vmatmul.mubr.msk.bf16.vlgmr.msra.gmra.mrb[16].mxu1 %vm769_vm3, %v817_v2 }
 0x513   : > { %v862_v4 = vpop.f32.mrb[12].mxu0 }
 0x514   : > { %v1269_v5 = vpop.f32.mrb[13].mxu0 }
 0x515   : > { %v865_v6 = vpop.f32.mrb[14].mxu0 }
 0x516   : > { %v1270_v7 = vpop.f32.mrb[15].mxu0 }
 0x57c   : > { %v911_v10 = vpop.f32.mrb[12].mxu1 }
 0x57d   : > { %1016 = vrot.lane.b32.xlu1 %v911_v10, %s1367_s30  ;;  %v1275_v11 = vpop.f32.mrb[13].mxu1  ;;  %v960_v12 = vpop.f32.mrb[16].mxu0 }
 0x57e   : > { %v914_v13 = vpop.f32.mrb[14].mxu1  ;;  %1020 = vrot.lane.b32.xlu0 %v960_v12, %s1368_s11  ;;  %v1281_v14 = vpop.f32.mrb[17].mxu0 }
 0x57f   : > { %v1276_v15 = vpop.f32.mrb[15].mxu1  ;;  %v963_v16 = vpop.f32.mrb[18].mxu0 }
 0x580   : > { %v1282_v17 = vpop.f32.mrb[19].mxu0 }
 0x584   : > { %v1009_v18 = vpop.f32.mrb[16].mxu1 }
 0x585   : > { %1024 = vrot.lane.b32.xlu1 %v1009_v18, %s1369_s12  ;;  %v1287_v19 = vpop.f32.mrb[17].mxu1 }
 0x586   : > { %v1012_v20 = vpop.f32.mrb[18].mxu1 }
 0x587   : > { %v1288_v3 = vpop.f32.mrb[19].mxu1 }
 0x5ef   : > { %v1017_v21 = vpop.permute.xlu1 %1016 }
 0x5f0   : > { %v1027_v22 = vsel %vm584_vm2, %v862_v4, %v1017_v21  ;;  %v1021_v23 = vpop.permute.xlu0 %1020 }
 0x5f1   : > { %v1029_v24 = vsel %vm1028_vm5, %v1027_v22, %v1021_v23 }
 0x5f7   : > { %v1025_v25 = vpop.permute.xlu1 %1024 }
 0x5f8   : > { %v1031_v26 = vsel %vm1030_vm6, %v1029_v24, %v1025_v25 }
 0x5f9   : > { %v1032_v27 = vpack.c.bf16 %v1031_v26, %v1031_v26 }
 0x5fb   : > { %1294 = vmatmul.mubr.msk.bf16.vlgmr.msra.gmra.mrb[20].mxu0 %vm381_vm0, %v1032_v27 }
 0x6ce   : > { %v1093_v29 = vpop.f32.mrb[20].mxu0 }
 0x6cf   : > { %v1094_v30 = vadd.f32 %v1193_v28, %v1093_v29  ;;  %v1295_v31 = vpop.f32.mrb[21].mxu0 }
 0x6d0   : > { %v1096_v32 = vpop.f32.mrb[22].mxu0 }
 0x6d1   : > { %v1099_v34 = vadd.f32 %v1094_v30, %v1441_v0  ;;  %v1296_v33 = vpop.f32.mrb[23].mxu0 }
 0x6d3   : > { %1100 = vst.msk [vmem:[%s374_s20] sm:$0xff] %vm381_vm0, %v1099_v34 }
 0x6d4 PF: > { %s20_s13 = sadd.s32 1, %s1359_s13  }
 0x6d5   : > { %p17_p4 = scmp.ge.s32.totalorder %s20_s13, 4  }
 0x6d7   :  { %19 = sbr.rel (!%p17_p4) target bundleno = 1 (0x1), region = 93 }

// kernel: transformer_decoder_layer.3
= control target key start
LH: loop header
LB: loop body
LE: loop exit
PB: predicated region body
PF: predicated region fallthrough
CT: control target
= control target key end

     0   :  { %s1191_s24 = smov 0   ;;  %s1326_s0 = inlined_call_operand.vmem [shape: f32[2,8,32], index: 0, kind: input, shape index: {}]   ;;  %s1327_s1 = inlined_call_operand.vmem [shape: f32[1,32], index: 1, kind: input, shape index: {}]   ;;  %s1328_s2 = inlined_call_operand.vmem [shape: f32[1,32], index: 2, kind: input, shape index: {}]   ;;  %s1329_s3 = inlined_call_operand.vmem [shape: bf16[32,96], index: 3, kind: input, shape index: {}]   ;;  %s1330_s4 = inlined_call_operand.vmem [shape: f32[1,96], index: 4, kind: input, shape index: {}]   ;;  %s1331_s5 = inlined_call_operand.vmem [shape: bf16[32,32], index: 5, kind: input, shape index: {}]   ;;  %s1332_s6 = inlined_call_operand.vmem [shape: f32[1,32], index: 6, kind: input, shape index: {}]   ;;  %s1333_s7 = inlined_call_operand.vmem [shape: f32[2,8,32], index: 7, kind: output, shape index: {}]  }
   0x1 LB: > { %s980_s25 = sadd.s32 4294967295, %s1139_s24   ;;  %p984_p0 = scmp.ge.s32.totalorder %s1139_s24, 1  ;;  %s1139_s24 = sphi %s1191_s24, %s17_s24  }
   0x2   : > { %p236_p1 = scmp.lt.s32.totalorder %s1139_s24, 3 }
   0x4   : > { %p237_p2 = pnand %p984_p0, %p236_p1 }
   0x5   : > { %p266_p3 = scmp.lt.s32.totalorder (!%p237_p2), %s980_s25, 1  ;;  %vm278_vm0 = vcmask (!%p237_p2), 261120   ;;  %v1111_v7 = vld [vmem:[%s1329_s3] sm:$0xff] (!%p237_p2)   ;;  %v1141_v8 = vmov (!%p237_p2), 0.0   ;;  %vm1142_vm1 = vmmov (!%p237_p2), 0   ;;  %v1112_v9 = vld [vmem:[%s1329_s3 + $0x8] sm:$0xff] (!%p237_p2)  }
   0x6   : > { %240 = sbr.rel (%p237_p2) target bundleno = 1869 (0x74d), region = 48  ;;  %1029 = vmatprep.subr.bf16.mxu0 (!%p237_p2), %v1141_v8  ;;  %1033 = vmatprep.mubr.msk.bf16.mxu0 (!%p237_p2), %vm1142_vm1, %v1141_v8  ;;  %v987_v14 = vld [vmem:[%s1327_s1] ss:$0 sm:$0xff] (!%p237_p2)  ;;  %s1143_s17 = smov (!%p237_p2), 104   ;;  %vm406_vm2 = vcmask (!%p237_p2), 64512   ;;  %vm653_vm3 = vcmask (!%p237_p2), 1043456  }
   0x7   : > { %1030 = vmatpush3.bf16.msra.mxu0 (!%p237_p2), %v1111_v7  ;;  %1037 = vmatprep.subr.bf16.mxu1 (!%p237_p2), %v1141_v8  ;;  %v988_v16 = vld [vmem:[%s1328_s2] ss:$0 sm:$0xff] (!%p237_p2)  ;;  %s1144_s18 = smov (!%p237_p2), 120   ;;  %s1145_s19 = smov (!%p237_p2), 112   ;;  %vm854_vm4 = vcmask (!%p237_p2), 130048   ;;  %vm856_vm5 = vcmask (!%p237_p2), 195584  }
   0x8   : > { %1031 = vmatprep.subr.bf16.mxu0 (!%p237_p2), %v1141_v8  ;;  %1039 = vmatprep.mubr.msk.bf16.mxu1 (!%p237_p2), %vm1142_vm1, %v1141_v8  ;;  %v989_v20 = vld [vmem:[%s1330_s4] ss:$0 sm:$0xff] (!%p237_p2)  ;;  %s1146_s20 = smov (!%p237_p2), 96   ;;  %s1147_s21 = smov (!%p237_p2), 64  }
   0x9   : > { %s1149_s30 = smov (!%p237_p2), 16   ;;  %s1150_s8 = smov (!%p237_p2), 24  }
   0xb   : > { %1032 = vmatpush3.bf16.msra.mxu0 (!%p237_p2), %v1112_v9 }
   0xc   : > { %1043 = vmatprep.subr.bf16.mxu0 (!%p237_p2), %v1141_v8 }
   0xd   : > { %s1335_s25 = smov (!%p266_p3, %s980_s25), 1 }
   0xe   : > { %s985_s26 = sshll.u32 %s1335_s25, 3 }
   0xf   : > { %s269_s29 = scalar_lea.vmem %s1326_s0, %s985_s26  ;;  %s273_s13 = scalar_lea.vmem %s1333_s7, %s985_s26 }
  0x10   : > { %v1207_v0 = vld [vmem:[%s269_s29] sm:$0xff]  ;;  %s1148_s29 = smov 8  }
  0x11   : > { %v279_v1 = vsel %vm278_vm0, %v1207_v0, 0.0 }
  0x12   : > { %280 = vadd.xlane.f32.xlu0 %v279_v1 }
  0x9f   : > { %v281_v2 = vpop.xlane.xlu0 %280 }
  0xa0   : > { %v283_v3 = vmul.f32 0.03125, %v281_v2 }
  0xa2   : > { %v284_v4 = vsub.f32 %v1207_v0, %v283_v3 }
  0xa4   : > { %v285_v5 = vmul.f32 %v284_v4, %v284_v4 }
  0xa6   : > { %v286_v6 = vsel %vm278_vm0, %v285_v5, 0.0 }
  0xa7   : > { %287 = vadd.xlane.f32.xlu0 %v286_v6 }
 0x134   : > { %v288_v10 = vpop.xlane.xlu0 %287 }
 0x135   : > { %v289_v11 = vmul.f32 0.03125, %v288_v10 }
 0x137   : > { %v290_v12 = vadd.f32 1e-05, %v289_v11 }
 0x139   : > { %1115 = vrsqrt.f32 %v290_v12 }
 0x143   : > { %v1116_v13 = vpop.eup %1115 }
 0x144   : > { %v292_v15 = vmul.f32 %v1116_v13, %v284_v4 }
 0x146   : > { %v299_v17 = vmul.f32 %v987_v14, %v292_v15 }
 0x148   : > { %v306_v18 = vadd.f32 %v988_v16, %v299_v17 }
 0x14a   : > { %v307_v19 = vpack.c.bf16 %v306_v18, %v306_v18 }
 0x14c   : > { %1034 = vmatmul.mubr.msk.bf16.vlgmr.msra.gmra.mrb[0].mxu0 %vm278_vm0, %v307_v19 }
 0x14d   : > { %1045 = vmatprep.mubr.msk.bf16.mxu0 %vm1142_vm1, %v1141_v8 }
 0x21f   : > { %v368_v21 = vpop.f32.mrb[0].mxu0 }
 0x220   : > { %v369_v22 = vadd.f32 %v989_v20, %v368_v21  ;;  %v1035_v23 = vpop.f32.mrb[1].mxu0 }
 0x221   : > { %v371_v24 = vpop.f32.mrb[2].mxu0 }
 0x222   : > { %396 = vrot.lane.b32.xlu0 %v369_v22, %s1143_s17  ;;  %390 = vrot.lane.b32.xlu1 %v369_v22, %s1144_s18  ;;  %v1036_v25 = vpop.f32.mrb[3].mxu0  ;;  %v374_v26 = vmul.f32 0.35355338, %v369_v22  ;;  %v1239_v27 = vpack.c.bf16 %v369_v22, %v369_v22 }
 0x224   : > { %v385_v36 = vpack.c.bf16 %v374_v26, %v374_v26 }
 0x226   : > { %393 = vrot.lane.b32.xlu1 %v369_v22, %s1145_s19  ;;  %382 = vrot.lane.b32.xlu0 %v374_v26, %s1143_s17 }
 0x22a   : > { %404 = vrot.lane.b32.xlu1 %v1239_v27, %s1146_s20 }
 0x22e   : > { %376 = vrot.lane.b32.xlu1 %v374_v26, %s1144_s18 }
 0x294   : > { %v391_v28 = vpop.permute.xlu1 %390  ;;  %v397_v32 = vpop.permute.xlu0 %396 }
 0x295   : > { %v1242_v29 = vpack.c.bf16 %v391_v28, %v391_v28  ;;  %v1248_v34 = vpack.c.bf16 %v397_v32, %v397_v32 }
 0x297   : > { %454 = vrot.lane.b32.xlu1 %v1242_v29, %s1146_s20 }
 0x298   : > { %v394_v30 = vpop.permute.xlu1 %393  ;;  %v383_v45 = vpop.permute.xlu0 %382 }
 0x299   : > { %v1245_v31 = vpack.c.bf16 %v394_v30, %v394_v30  ;;  %v388_v48 = vpack.c.bf16 %v383_v45, %v383_v45 }
 0x29b   : > { %503 = vrot.lane.b32.xlu1 %v1245_v31, %s1146_s20 }
 0x29c   : > { %v405_v33 = vpop.permute.xlu1 %404 }
 0x29d   : > { %v411_v35 = vsel %vm406_vm2, %v405_v33, 0 }
 0x29e   : > { %1038 = vmatpush3.bf16.xpose.msra.mxu1 %v411_v35 }
 0x29f   : > { %552 = vrot.lane.b32.xlu1 %v1248_v34, %s1146_s20  ;;  %1049 = vmatprep.subr.bf16.mxu1 %v1141_v8 }
 0x2a0   : > { %v377_v37 = vpop.permute.xlu1 %376 }
 0x2a1   : > { %v386_v42 = vpack.c.bf16 %v377_v37, %v377_v37 }
 0x2a3   : > { %379 = vrot.lane.b32.xlu1 %v374_v26, %s1145_s19 }
 0x2a5   : > { %1040 = vmatmul.mubr.msk.bf16.vlgmr.msra.gmra.mrb[0].mxu1 %vm406_vm2, %v385_v36 }
 0x2a6   : > { %1051 = vmatprep.mubr.msk.bf16.mxu1 %vm1142_vm1, %v1141_v8 }
 0x309   : > { %v455_v38 = vpop.permute.xlu1 %454 }
 0x30a   : > { %v460_v39 = vsel %vm406_vm2, %v455_v38, 0 }
 0x30b   : > { %1044 = vmatpush3.bf16.xpose.msra.mxu0 %v460_v39 }
 0x30c   : > { %1055 = vmatprep.subr.bf16.mxu0 %v1141_v8 }
 0x30d   : > { %v504_v40 = vpop.permute.xlu1 %503 }
 0x30e   : > { %v509_v41 = vsel %vm406_vm2, %v504_v40, 0 }
 0x30f   : > { %1050 = vmatpush3.bf16.xpose.msra.mxu1 %v509_v41 }
 0x310   : > { %1061 = vmatprep.subr.bf16.mxu1 %v1141_v8 }
 0x311   : > { %v553_v43 = vpop.permute.xlu1 %552 }
 0x312   : > { %v558_v44 = vsel %vm406_vm2, %v553_v43, 0  ;;  %1046 = vmatmul.mubr.msk.bf16.vlgmr.msra.gmra.mrb[4].mxu0 %vm406_vm2, %v386_v42 }
 0x313   : > { %1056 = vmatpush3.bf16.xpose.msra.mxu0 %v558_v44  ;;  %1057 = vmatprep.mubr.msk.bf16.mxu0 %vm1142_vm1, %v1141_v8 }
 0x314   : > { %1067 = vmatprep.subr.bf16.mxu0 %v1141_v8 }
 0x315   : > { %v380_v46 = vpop.permute.xlu1 %379 }
 0x316   : > { %v387_v47 = vpack.c.bf16 %v380_v46, %v380_v46 }
 0x318   : > { %1052 = vmatmul.mubr.msk.bf16.vlgmr.msra.gmra.mrb[4].mxu1 %vm406_vm2, %v387_v47 }
 0x319   : > { %1063 = vmatprep.mubr.msk.bf16.mxu1 %vm1142_vm1, %v1141_v8 }
 0x31a   : > { %1058 = vmatmul.mubr.msk.bf16.vlgmr.msra.gmra.mrb[8].mxu0 %vm406_vm2, %v388_v48 }
 0x31b   : > { %1069 = vmatprep.mubr.msk.bf16.mxu0 %vm1142_vm1, %v1141_v8 }
 0x378   : > { %v447_v49 = vpop.f32.mrb[0].mxu1 }
 0x379   : > { %v1041_v50 = vpop.f32.mrb[1].mxu1  ;;  %v600_v51 = vsel %vm406_vm2, %v447_v49, -inf }
 0x37a   : > { %601 = vmax.xlane.f32.xlu1 %v600_v51  ;;  %v450_v52 = vpop.f32.mrb[2].mxu1 }
 0x37b   : > { %v1042_v53 = vpop.f32.mrb[3].mxu1 }
 0x3e5   : > { %v496_v54 = vpop.f32.mrb[4].mxu0 }
 0x3e6   : > { %v1047_v55 = vpop.f32.mrb[5].mxu0  ;;  %v603_v56 = vsel %vm406_vm2, %v496_v54, -inf }
 0x3e7   : > { %604 = vmax.xlane.f32.xlu0 %v603_v56  ;;  %v499_v57 = vpop.f32.mrb[6].mxu0  ;;  %v1113_v55 = vld [vmem:[%s1331_s5] sm:$0xff]   ;;  %v1114_v56 = vld [vmem:[%s1331_s5 + $0x8] sm:$0xff]  }
 0x3e8   : > { %v1048_v58 = vpop.f32.mrb[7].mxu0 }
 0x3eb   : > { %v545_v59 = vpop.f32.mrb[4].mxu1 }
 0x3ec   : > { %v1053_v60 = vpop.f32.mrb[5].mxu1  ;;  %v606_v61 = vsel %vm406_vm2, %v545_v59, -inf }
 0x3ed   : > { %v548_v62 = vpop.f32.mrb[6].mxu1  ;;  %607 = vmax.xlane.f32.xlu0 %v606_v61  ;;  %v594_v63 = vpop.f32.mrb[8].mxu0 }
 0x3ee   : > { %v1054_v1 = vpop.f32.mrb[7].mxu1  ;;  %v1059_v2 = vpop.f32.mrb[9].mxu0  ;;  %v609_v3 = vsel %vm406_vm2, %v594_v63, -inf }
 0x3ef   : > { %610 = vmax.xlane.f32.xlu1 %v609_v3  ;;  %v597_v4 = vpop.f32.mrb[10].mxu0 }
 0x3f0   : > { %v1060_v5 = vpop.f32.mrb[11].mxu0 }
 0x400   : > { %697 = vrot.lane.b32.xlu1 %v1242_v29, %s1147_s21 }
 0x403   : > { %648 = vrot.lane.b32.xlu0 %v1239_v27, %s1147_s21 }
 0x407   : > { %v602_v6 = vpop.xlane.xlu1 %601 }
 0x408   : > { %v612_v7 = vsub.f32 %v447_v49, %v602_v6 }
 0x40a   : > { %v616_v9 = vmul.f32 1.442695, %v612_v7 }
 0x40c   : > { %1117 = vpow2.f32 %v616_v9 }
 0x416   : > { %v1118_v10 = vpop.eup %1117 }
 0x417   : > { %v624_v11 = vsel %vm406_vm2, %v1118_v10, 0.0 }
 0x422   : > { %625 = vadd.xlane.f32.xlu0 %v624_v11 }
 0x474   : > { %v605_v12 = vpop.xlane.xlu0 %604 }
 0x475   : > { %v613_v13 = vsub.f32 %v496_v54, %v605_v12 }
 0x477   : > { %v618_v14 = vmul.f32 1.442695, %v613_v13  ;;  %v1001_v13 = vld [vmem:[%s1332_s6] ss:$0 sm:$0xff] }
 0x479   : > { %1119 = vpow2.f32 %v618_v14 }
 0x47a   : > { %v608_v15 = vpop.xlane.xlu0 %607 }
 0x47b   : > { %v614_v16 = vsub.f32 %v545_v59, %v608_v15 }
 0x47c   : > { %v611_v17 = vpop.xlane.xlu1 %610 }
 0x47d   : > { %v620_v18 = vmul.f32 1.442695, %v614_v16  ;;  %v615_v19 = vsub.f32 %v594_v63, %v611_v17 }
 0x47e   : > { %v649_v20 = vpop.permute.xlu0 %648 }
 0x47f   : > { %1121 = vpow2.f32 %v620_v18  ;;  %v622_v21 = vmul.f32 1.442695, %v615_v19  ;;  %v655_v22 = vsel %vm653_vm3, %v649_v20, 0 }
 0x480   : > { %1062 = vmatpush3.bf16.msra.mxu1 %v655_v22  ;;  %v698_v23 = vpop.permute.xlu1 %697 }
 0x481   : > { %1123 = vpow2.f32 %v622_v21  ;;  %v703_v24 = vsel %vm653_vm3, %v698_v23, 0  ;;  %1073 = vmatprep.subr.bf16.mxu1 %v1141_v8 }
 0x482   : > { %1068 = vmatpush3.bf16.msra.mxu0 %v703_v24 }
 0x483   : > { %v1120_v25 = vpop.eup %1119  ;;  %1079 = vmatprep.subr.bf16.mxu0 %v1141_v8 }
 0x484   : > { %v627_v26 = vsel %vm406_vm2, %v1120_v25, 0.0 }
 0x485   : > { %628 = vadd.xlane.f32.xlu1 %v627_v26 }
 0x489   : > { %v1122_v27 = vpop.eup %1121 }
 0x48a   : > { %v630_v28 = vsel %vm406_vm2, %v1122_v27, 0.0 }
 0x48b   : > { %v1124_v29 = vpop.eup %1123  ;;  %631 = vadd.xlane.f32.xlu0 %v630_v28 }
 0x48c   : > { %v633_v30 = vsel %vm406_vm2, %v1124_v29, 0.0 }
 0x48d   : > { %634 = vadd.xlane.f32.xlu1 %v633_v30 }
 0x49e   : > { %745 = vrot.lane.b32.xlu1 %v1245_v31, %s1147_s21 }
 0x4a1   : > { %793 = vrot.lane.b32.xlu0 %v1248_v34, %s1147_s21 }
 0x4af   : > { %v626_v32 = vpop.xlane.xlu0 %625 }
 0x4b0   : > { %1125 = vrcp.f32 %v626_v32 }
 0x4ba   : > { %v1126_v33 = vpop.eup %1125 }
 0x4bb   : > { %v637_v35 = vmul.f32 %v1126_v33, %v1118_v10 }
 0x4bd   : > { %v644_v36 = vpack.c.bf16 %v637_v35, %v637_v35 }
 0x4bf   : > { %1064 = vmatmul.mubr.msk.bf16.vlgmr.msra.gmra.mrb[8].mxu1 %vm406_vm2, %v644_v36 }
 0x4c0   : > { %1075 = vmatprep.mubr.msk.bf16.mxu1 %vm1142_vm1, %v1141_v8 }
 0x512   : > { %v629_v37 = vpop.xlane.xlu1 %628 }
 0x513   : > { %1127 = vrcp.f32 %v629_v37 }
 0x518   : > { %v632_v38 = vpop.xlane.xlu0 %631 }
 0x519   : > { %1129 = vrcp.f32 %v632_v38 }
 0x51a   : > { %v635_v39 = vpop.xlane.xlu1 %634 }
 0x51b   : > { %1131 = vrcp.f32 %v635_v39 }
 0x51c   : > { %v794_v34 = vpop.permute.xlu0 %793 }
 0x51d   : > { %v1128_v31 = vpop.eup %1127  ;;  %v799_v44 = vsel %vm653_vm3, %v794_v34, 0 }
 0x51e   : > { %v639_v40 = vmul.f32 %v1128_v31, %v1120_v25  ;;  %v746_v41 = vpop.permute.xlu1 %745 }
 0x51f   : > { %v751_v42 = vsel %vm653_vm3, %v746_v41, 0 }
 0x520   : > { %1074 = vmatpush3.bf16.msra.mxu1 %v751_v42  ;;  %v645_v43 = vpack.c.bf16 %v639_v40, %v639_v40 }
 0x521   : > { %1085 = vmatprep.subr.bf16.mxu1 %v1141_v8 }
 0x522   : > { %1070 = vmatmul.mubr.msk.bf16.vlgmr.msra.gmra.mrb[12].mxu0 %vm406_vm2, %v645_v43 }
 0x523   : > { %v1130_v45 = vpop.eup %1129  ;;  %1080 = vmatpush3.bf16.msra.mxu0 %v799_v44  ;;  %1081 = vmatprep.mubr.msk.bf16.mxu0 %vm1142_vm1, %v1141_v8 }
 0x524   : > { %v641_v46 = vmul.f32 %v1130_v45, %v1122_v27 }
 0x525   : > { %v1132_v47 = vpop.eup %1131 }
 0x526   : > { %v643_v48 = vmul.f32 %v1132_v47, %v1124_v29  ;;  %v646_v49 = vpack.c.bf16 %v641_v46, %v641_v46 }
 0x528   : > { %1076 = vmatmul.mubr.msk.bf16.vlgmr.msra.gmra.mrb[12].mxu1 %vm406_vm2, %v646_v49  ;;  %v647_v50 = vpack.c.bf16 %v643_v48, %v643_v48 }
 0x529   : > { %1089 = vmatprep.mubr.msk.bf16.mxu1 %vm1142_vm1, %v1141_v8  ;;  %1086 = vmatpush3.bf16.msra.mxu1 %v1113_v55 }
 0x52a   : > { %1082 = vmatmul.mubr.msk.bf16.vlgmr.msra.gmra.mrb[16].mxu0 %vm406_vm2, %v647_v50  ;;  %1087 = vmatprep.subr.bf16.mxu1 %v1141_v8 }
 0x52d   : > { %1088 = vmatpush3.bf16.msra.mxu1 %v1114_v56 }
 0x592   : > { %v691_v51 = vpop.f32.mrb[8].mxu1 }
 0x593   : > { %v1065_v52 = vpop.f32.mrb[9].mxu1 }
 0x594   : > { %v694_v53 = vpop.f32.mrb[10].mxu1 }
 0x595   : > { %v1066_v54 = vpop.f32.mrb[11].mxu1 }
 0x5f5   : > { %v739_v57 = vpop.f32.mrb[12].mxu0 }
 0x5f6   : > { %842 = vrot.lane.b32.xlu1 %v739_v57, %s1148_s29  ;;  %v1071_v58 = vpop.f32.mrb[13].mxu0 }
 0x5f7   : > { %v742_v59 = vpop.f32.mrb[14].mxu0 }
 0x5f8   : > { %v1072_v60 = vpop.f32.mrb[15].mxu0 }
 0x5fb   : > { %v787_v61 = vpop.f32.mrb[12].mxu1 }
 0x5fc   : > { %846 = vrot.lane.b32.xlu0 %v787_v61, %s1149_s30  ;;  %v1077_v62 = vpop.f32.mrb[13].mxu1 }
 0x5fd   : > { %v790_v63 = vpop.f32.mrb[14].mxu1  ;;  %v835_v1 = vpop.f32.mrb[16].mxu0 }
 0x5fe   : > { %v1078_v2 = vpop.f32.mrb[15].mxu1  ;;  %850 = vrot.lane.b32.xlu1 %v835_v1, %s1150_s8  ;;  %v1083_v8 = vpop.f32.mrb[17].mxu0 }
 0x5ff   : > { %v838_v3 = vpop.f32.mrb[18].mxu0 }
 0x600   : > { %v1084_v4 = vpop.f32.mrb[19].mxu0 }
 0x668   : > { %v843_v5 = vpop.permute.xlu1 %842 }
 0x669   : > { %v853_v6 = vsel %vm406_vm2, %v691_v51, %v843_v5 }
 0x66e   : > { %v847_v7 = vpop.permute.xlu0 %846 }
 0x66f   : > { %v855_v9 = vsel %vm854_vm4, %v853_v6, %v847_v7 }
 0x670   : > { %v851_v10 = vpop.permute.xlu1 %850 }
 0x671   : > { %v857_v11 = vsel %vm856_vm5, %v855_v9, %v851_v10 }
 0x672   : > { %v858_v12 = vpack.c.bf16 %v857_v11, %v857_v11 }
 0x674   : > { %1090 = vmatmul.mubr.msk.bf16.vlgmr.msra.gmra.mrb[16].mxu1 %vm278_vm0, %v858_v12 }
 0x747   : > { %v919_v14 = vpop.f32.mrb[16].mxu1 }
 0x748   : > { %v920_v15 = vadd.f32 %v1001_v13, %v919_v14  ;;  %v1091_v16 = vpop.f32.mrb[17].mxu1 }
 0x749   : > { %v922_v17 = vpop.f32.mrb[18].mxu1 }
 0x74a   : > { %v925_v18 = vadd.f32 %v920_v15, %v1207_v0  ;;  %v1092_v19 = vpop.f32.mrb[19].mxu1 }
 0x74c   : > { %926 = vst.msk [vmem:[%s273_s13] sm:$0xff] %vm278_vm0, %v925_v18 }
 0x74d PF: > { %s17_s24 = sadd.s32 1, %s1139_s24  }
 0x74e   : > { %p14_p4 = scmp.ge.s32.totalorder %s17_s24, 4  }
 0x750   :  { %16 = sbr.rel (!%p14_p4) target bundleno = 1 (0x1), region = 78 }

</bundles_post_ra>
